<compile_context>
chip_gen: v5e
topology: v5e:2x2
jax: 0.10.0
libtpu: 0.0.40
codegen_flags: <defaults>
</compile_context>

<pallas_src>
import functools

import numpy as np
import jax
import jax.numpy as jnp
from jax import lax
from jax.experimental import pallas as pl
from jax.experimental.pallas import tpu as pltpu

GN_CHANNELS = 16


def _round_up(x, m):
    return (x + m - 1) // m * m


# ------------------------------ Pallas kernel ------------------------------

def _fused_conv_gn_silu_kernel(x_ref, w_ref, pg_ref, o_ref, xpad_ref,
                               patch_ref, *, H, W, C_in, C_out, num_groups,
                               eps, bb, pad_off):
    """bb images: 3x3 conv (one folded-batch matmul) + bias + GroupNorm + SiLU.

    x_ref    : (bb, C_in, H*W)     f32   raw NCHW images, spatially flattened
    w_ref    : (C_out, 9*C_in)     bf16  tap-major folded conv weight (resident)
    pg_ref   : (C_out, 3)          f32   [conv bias | GN gamma | GN beta] (resident)
    o_ref    : (bb, C_out, H*W)    f32
    xpad_ref : (C_in, Lf_pad)      bf16  scratch: zero-haloed flat image
    patch_ref: (9*C_in, bb*H*W)    bf16  scratch: im2col patch matrix
    """
    HW = H * W
    cg = C_out // num_groups
    denom = float(cg * HW)

    # ---- constants hoisted out of the tap / batch loops ---------------------
    col = lax.broadcasted_iota(jnp.int32, (1, HW), 1) % W
    not_first = jnp.broadcast_to(col != 0, (C_in, HW))        # mask for kw == 0
    not_last = jnp.broadcast_to(col != (W - 1), (C_in, HW))   # mask for kw == 2
    zero_slab = jnp.zeros((C_in, HW), jnp.bfloat16)
    row = lax.broadcasted_iota(jnp.int32, (C_out, 1), 0)

    # ---- im2col into the patch scratch (batch folded along lanes) -----------
    xpad_ref[...] = jnp.zeros_like(xpad_ref)       # zero halo rows/tail (cheap)
    for b in range(bb):                            # static, small
        # aligned interior store (pad_off is a multiple of 128)
        xpad_ref[:, pad_off:pad_off + HW] = x_ref[b].astype(jnp.bfloat16)
        for kh in range(3):
            for kw in range(3):
                start = pad_off - (W + 1) + kh * W + kw      # static offset
                s = xpad_ref[:, start:start + HW]            # (C_in, HW) bf16
                if kw == 0:
                    s = jnp.where(not_first, s, zero_slab)   # left-edge wrap
                elif kw == 2:
                    s = jnp.where(not_last, s, zero_slab)    # right-edge wrap
                t = kh * 3 + kw
                patch_ref[t * C_in:(t + 1) * C_in, b * HW:(b + 1) * HW] = s

    # ---- single MXU matmul, f32 accumulation --------------------------------
    y = jnp.dot(w_ref[...], patch_ref[...],
                preferred_element_type=jnp.float32)          # (C_out, bb*HW)
    y = y + pg_ref[:, 0:1]                                   # conv bias

    gamma = pg_ref[:, 1:2]
    beta = pg_ref[:, 2:3]

    # ---- per-image GroupNorm + SiLU, lane-dense (C_out, HW) stores ----------
    for b in range(bb):
        yb = y[:, b * HW:(b + 1) * HW]                       # (C_out, HW) f32
        ch_sum = jnp.sum(yb, axis=1, keepdims=True)          # (C_out, 1)
        ch_sq = jnp.sum(yb * yb, axis=1, keepdims=True)      # (C_out, 1)
        mean_c = jnp.zeros((C_out, 1), jnp.float32)
        rstd_c = jnp.zeros((C_out, 1), jnp.float32)
        for g in range(num_groups):                          # static, tiny work
            mean = jnp.sum(ch_sum[g * cg:(g + 1) * cg]) / denom
            var = jnp.sum(ch_sq[g * cg:(g + 1) * cg]) / denom - mean * mean
            rstd = lax.rsqrt(jnp.maximum(var, 0.0) + eps)
            in_g = (row >= g * cg) & (row < (g + 1) * cg)
            mean_c = jnp.where(in_g, mean, mean_c)
            rstd_c = jnp.where(in_g, rstd, rstd_c)
        yn = (yb - mean_c) * (rstd_c * gamma) + beta
        # SiLU: sigmoid via EUP exp + approx reciprocal (VALU slot stays free)
        yn = yn * pl.reciprocal(1.0 + jnp.exp(-yn), approx=True)
        o_ref[b] = yn.astype(o_ref.dtype)


# --------------------------------- wrapper ---------------------------------

def mgma_convsc_forward(params, x, *, eps=1e-5, num_batch_blocks=1):
    """MGMAConvSC forward (default config). x: (B, C_in, H, W) f32 NCHW.

    num_batch_blocks=1 folds the whole batch into one grid step (best for
    v5e/v6e); use 2 on v7x so both TensorCores get work.
    """
    B, C_in, H, W = x.shape
    w = params["w"]
    C_out = w.shape[0]
    assert w.shape == (C_out, C_in, 3, 3), "only the default 3x3 path is wired"
    assert C_out % GN_CHANNELS == 0
    num_groups = C_out // GN_CHANNELS
    assert B % num_batch_blocks == 0
    bb = B // num_batch_blocks
    HW = H * W

    # Padded flat-image scratch geometry: interior starts at a 128-aligned
    # lane offset; total length rounded up to a multiple of 128.
    pad_off = _round_up(W + 1, 128)
    lf_pad = _round_up(pad_off + HW + W + 1, 128)

    # Raw f32 input goes straight to the kernel (reshape is metadata-only).
    xf = x.reshape(B, C_in, HW)

    # (C_out, C_in, 3, 3) -> (C_out, 9*C_in), tap-major to match patch order.
    w2 = jnp.transpose(w, (0, 2, 3, 1)).reshape(C_out, 9 * C_in)
    w2 = w2.astype(jnp.bfloat16)
    # Pack conv bias / GN gamma / GN beta into one resident (C_out, 3) array.
    pg = jnp.stack([params["b"], params["gamma"], params["beta"]],
                   axis=1).astype(jnp.float32)

    kern = functools.partial(_fused_conv_gn_silu_kernel, H=H, W=W, C_in=C_in,
                             C_out=C_out, num_groups=num_groups, eps=eps,
                             bb=bb, pad_off=pad_off)

    out = pl.pallas_call(
        kern,
        out_shape=jax.ShapeDtypeStruct((B, C_out, HW), jnp.float32),
        grid_spec=pltpu.PrefetchScalarGridSpec(
            num_scalar_prefetch=0,
            grid=(num_batch_blocks,),
            in_specs=[
                pl.BlockSpec((bb, C_in, HW), lambda i: (i, 0, 0)),
                pl.BlockSpec((C_out, 9 * C_in), lambda i: (0, 0)),   # resident
                pl.BlockSpec((C_out, 3), lambda i: (0, 0)),          # resident
            ],
            out_specs=pl.BlockSpec((bb, C_out, HW), lambda i: (i, 0, 0)),
            scratch_shapes=[
                pltpu.VMEM((C_in, lf_pad), jnp.bfloat16),        # padded image
                pltpu.VMEM((9 * C_in, bb * HW), jnp.bfloat16),   # im2col patches
            ],
        ),
        compiler_params=pltpu.CompilerParams(
            dimension_semantics=("parallel",)),
    )(xf, w2, pg)

    return out.reshape(B, C_out, H, W)


# ----------------------------- params / reference ---------------------------

def init_params(key, C_in, C_out, ksize=3):
    # BasicConv2d._init_weights: trunc_normal_(std=0.02), conv bias 0,
    # GroupNorm weight 1 / bias 0.
    w = 0.02 * jax.random.truncated_normal(
        key, -2.0, 2.0, (C_out, C_in, ksize, ksize), jnp.float32)
    return {
        "w": w,
        "b": jnp.zeros((C_out,), jnp.float32),
        "gamma": jnp.ones((C_out,), jnp.float32),
        "beta": jnp.zeros((C_out,), jnp.float32),
    }


def reference_forward(params, x, eps=1e-5):
    """Pure-JAX reference (Conv2d 3x3 pad=1 + bias -> GroupNorm -> SiLU)."""
    w, b = params["w"], params["b"]
    C_out = w.shape[0]
    num_groups = C_out // GN_CHANNELS
    y = lax.conv_general_dilated(x, w, (1, 1), "SAME",
                                 dimension_numbers=("NCHW", "OIHW", "NCHW"))
    y = y + b[None, :, None, None]
    B, C, H, W = y.shape
    yg = y.reshape(B, num_groups, -1)
    mean = jnp.mean(yg, axis=-1, keepdims=True)
    var = jnp.var(yg, axis=-1, keepdims=True)
    yn = ((yg - mean) / jnp.sqrt(var + eps)).reshape(B, C, H, W)
    yn = yn * params["gamma"][None, :, None, None] + params["beta"][None, :, None, None]
    return yn * jax.nn.sigmoid(yn)


# ------------------------------------ main ----------------------------------

if __name__ == "__main__":
    B, C_in, C_out, H, W = 2, 16, 32, 16, 16

    key = jax.random.PRNGKey(0)
    kx, kp, k1, k2, k3 = jax.random.split(key, 5)
    params = init_params(kp, C_in, C_out)
    # Perturb bias / GN affine so those code paths are actually exercised.
    params["b"] = 0.1 * jax.random.normal(k1, (C_out,), jnp.float32)
    params["gamma"] = 1.0 + 0.1 * jax.random.normal(k2, (C_out,), jnp.float32)
    params["beta"] = 0.1 * jax.random.normal(k3, (C_out,), jnp.float32)

    x = jax.random.normal(kx, (B, C_in, H, W), jnp.float32)

    fwd = jax.jit(mgma_convsc_forward)
    out = jax.block_until_ready(fwd(params, x))

    assert out.shape == (B, C_out, H, W), out.shape
    assert bool(jnp.all(jnp.isfinite(out)))

    ref = reference_forward(params, x)
    np.testing.assert_allclose(np.asarray(out), np.asarray(ref),
                               atol=7e-2, rtol=7e-2)
    print("KERNEL_OK")
</pallas_src>

<mosaic_0001>
module attributes {stable_mosaic.version = 11 : i64} {
  func.func @_fused_conv_gn_silu_kernel(%arg0: i32, %arg1: memref<2x16x256xf32, #tpu.memory_space<vmem>>, %arg2: memref<32x144xbf16, #tpu.memory_space<vmem>>, %arg3: memref<32x3xf32, #tpu.memory_space<vmem>>, %arg4: memref<2x32x256xf32, #tpu.memory_space<vmem>>, %arg5: memref<16x512xbf16, #tpu.memory_space<vmem>>, %arg6: memref<144x512xbf16, #tpu.memory_space<vmem>>) attributes {dimension_semantics = [#tpu.dimension_semantics<parallel>], iteration_bounds = array<i64: 1>, scalar_prefetch = 0 : i64, scratch_operands = 2 : i64, tpu.core_type = #tpu.core_type<tc>, window_params = [{transform_indices = @transform_0, window_bounds = array<i64: 2, 16, 256>}, {pipeline_mode = #tpu.pipeline_mode<synchronous>, transform_indices = @transform_1, window_bounds = array<i64: 32, 144>}, {pipeline_mode = #tpu.pipeline_mode<synchronous>, transform_indices = @transform_2, window_bounds = array<i64: 32, 3>}, {transform_indices = @transform_3, window_bounds = array<i64: 2, 32, 256>}]} {
    %0 = tpu.iota {dimensions = array<i32: 1>} : vector<1x256xi32>
    %c16_i32 = arith.constant 16 : i32
    %c0_i32 = arith.constant 0 : i32
    %1 = arith.cmpi eq, %c16_i32, %c0_i32 : i32
    %c1_i32 = arith.constant 1 : i32
    %2 = arith.select %1, %c1_i32, %c16_i32 : i32
    %3 = vector.broadcast %2 : i32 to vector<1x256xi32>
    %4 = arith.remsi %0, %3 : vector<1x256xi32>
    %c0_i32_0 = arith.constant 0 : i32
    %5 = vector.broadcast %c0_i32_0 : i32 to vector<1x256xi32>
    %6 = arith.cmpi ne, %4, %5 : vector<1x256xi32>
    %c0_i32_1 = arith.constant 0 : i32
    %7 = vector.broadcast %c0_i32_1 : i32 to vector<1x256xi32>
    %8 = arith.cmpi slt, %4, %7 : vector<1x256xi32>
    %c0_i32_2 = arith.constant 0 : i32
    %9 = arith.cmpi slt, %2, %c0_i32_2 : i32
    %10 = vector.broadcast %9 : i1 to vector<1x256xi1>
    %11 = vector.broadcast %10 : vector<1x256xi1> to vector<1x256xi1>
    %12 = arith.xori %8, %11 : vector<1x256xi1>
    %13 = arith.andi %12, %6 : vector<1x256xi1>
    %14 = vector.broadcast %2 : i32 to vector<1x256xi32>
    %15 = arith.addi %4, %14 : vector<1x256xi32>
    %16 = arith.select %13, %15, %4 : vector<1x256xi1>, vector<1x256xi32>
    %c0_i32_3 = arith.constant 0 : i32
    %17 = vector.broadcast %c0_i32_3 : i32 to vector<1x256xi32>
    %18 = arith.cmpi ne, %16, %17 : vector<1x256xi32>
    %19 = vector.shape_cast %18 : vector<1x256xi1> to vector<1x256xi1>
    %20 = vector.broadcast %19 : vector<1x256xi1> to vector<16x256xi1>
    %c15_i32 = arith.constant 15 : i32
    %21 = vector.broadcast %c15_i32 : i32 to vector<1x256xi32>
    %22 = arith.cmpi ne, %16, %21 : vector<1x256xi32>
    %23 = vector.shape_cast %22 : vector<1x256xi1> to vector<1x256xi1>
    %24 = vector.broadcast %23 : vector<1x256xi1> to vector<16x256xi1>
    %cst = arith.constant 0.000000e+00 : bf16
    %25 = vector.broadcast %cst : bf16 to vector<16x256xbf16>
    %26 = tpu.iota {dimensions = array<i32: 0>} : vector<32x1xi32>
    %cst_4 = arith.constant 0.000000e+00 : bf16
    %27 = vector.broadcast %cst_4 : bf16 to vector<16x512xbf16>
    %c0 = arith.constant 0 : index
    %c0_5 = arith.constant 0 : index
    %28 = vector.load %arg5[%c0, %c0_5] : memref<16x512xbf16, #tpu.memory_space<vmem>>, vector<16x512xbf16>
    tpu.vector_store %arg5[%c0, %c0_5], %27 {strides = array<i32>} : memref<16x512xbf16, #tpu.memory_space<vmem>>, vector<16x512xbf16>,
    %c0_6 = arith.constant 0 : index
    %c0_7 = arith.constant 0 : index
    %c0_8 = arith.constant 0 : index
    %29 = vector.load %arg1[%c0_6, %c0_7, %c0_8] : memref<2x16x256xf32, #tpu.memory_space<vmem>>, vector<1x16x256xf32>
    %30 = vector.shape_cast %29 : vector<1x16x256xf32> to vector<16x256xf32>
    %31 = arith.truncf %30 : vector<16x256xf32> to vector<16x256xbf16>
    %c0_9 = arith.constant 0 : index
    %c128 = arith.constant 128 : index
    %32 = vector.load %arg5[%c0_9, %c128] : memref<16x512xbf16, #tpu.memory_space<vmem>>, vector<16x256xbf16>
    tpu.vector_store %arg5[%c0_9, %c128], %31 {strides = array<i32>} : memref<16x512xbf16, #tpu.memory_space<vmem>>, vector<16x256xbf16>,
    %c0_10 = arith.constant 0 : index
    %c111 = arith.constant 111 : index
    %33 = vector.load %arg5[%c0_10, %c111] : memref<16x512xbf16, #tpu.memory_space<vmem>>, vector<16x256xbf16>
    %34 = arith.select %20, %33, %25 : vector<16x256xi1>, vector<16x256xbf16>
    %c0_11 = arith.constant 0 : index
    %c0_12 = arith.constant 0 : index
    %35 = vector.load %arg6[%c0_11, %c0_12] : memref<144x512xbf16, #tpu.memory_space<vmem>>, vector<16x256xbf16>
    tpu.vector_store %arg6[%c0_11, %c0_12], %34 {strides = array<i32>} : memref<144x512xbf16, #tpu.memory_space<vmem>>, vector<16x256xbf16>,
    %c0_13 = arith.constant 0 : index
    %c112 = arith.constant 112 : index
    %36 = vector.load %arg5[%c0_13, %c112] : memref<16x512xbf16, #tpu.memory_space<vmem>>, vector<16x256xbf16>
    %c16 = arith.constant 16 : index
    %c0_14 = arith.constant 0 : index
    %37 = vector.load %arg6[%c16, %c0_14] : memref<144x512xbf16, #tpu.memory_space<vmem>>, vector<16x256xbf16>
    tpu.vector_store %arg6[%c16, %c0_14], %36 {strides = array<i32>} : memref<144x512xbf16, #tpu.memory_space<vmem>>, vector<16x256xbf16>,
    %c0_15 = arith.constant 0 : index
    %c113 = arith.constant 113 : index
    %38 = vector.load %arg5[%c0_15, %c113] : memref<16x512xbf16, #tpu.memory_space<vmem>>, vector<16x256xbf16>
    %39 = arith.select %24, %38, %25 : vector<16x256xi1>, vector<16x256xbf16>
    %c32 = arith.constant 32 : index
    %c0_16 = arith.constant 0 : index
    %40 = vector.load %arg6[%c32, %c0_16] : memref<144x512xbf16, #tpu.memory_space<vmem>>, vector<16x256xbf16>
    tpu.vector_store %arg6[%c32, %c0_16], %39 {strides = array<i32>} : memref<144x512xbf16, #tpu.memory_space<vmem>>, vector<16x256xbf16>,
    %c0_17 = arith.constant 0 : index
    %c127 = arith.constant 127 : index
    %41 = vector.load %arg5[%c0_17, %c127] : memref<16x512xbf16, #tpu.memory_space<vmem>>, vector<16x256xbf16>
    %42 = arith.select %20, %41, %25 : vector<16x256xi1>, vector<16x256xbf16>
    %c48 = arith.constant 48 : index
    %c0_18 = arith.constant 0 : index
    %43 = vector.load %arg6[%c48, %c0_18] : memref<144x512xbf16, #tpu.memory_space<vmem>>, vector<16x256xbf16>
    tpu.vector_store %arg6[%c48, %c0_18], %42 {strides = array<i32>} : memref<144x512xbf16, #tpu.memory_space<vmem>>, vector<16x256xbf16>,
    %c0_19 = arith.constant 0 : index
    %c128_20 = arith.constant 128 : index
    %44 = vector.load %arg5[%c0_19, %c128_20] : memref<16x512xbf16, #tpu.memory_space<vmem>>, vector<16x256xbf16>
    %c64 = arith.constant 64 : index
    %c0_21 = arith.constant 0 : index
    %45 = vector.load %arg6[%c64, %c0_21] : memref<144x512xbf16, #tpu.memory_space<vmem>>, vector<16x256xbf16>
    tpu.vector_store %arg6[%c64, %c0_21], %44 {strides = array<i32>} : memref<144x512xbf16, #tpu.memory_space<vmem>>, vector<16x256xbf16>,
    %c0_22 = arith.constant 0 : index
    %c129 = arith.constant 129 : index
    %46 = vector.load %arg5[%c0_22, %c129] : memref<16x512xbf16, #tpu.memory_space<vmem>>, vector<16x256xbf16>
    %47 = arith.select %24, %46, %25 : vector<16x256xi1>, vector<16x256xbf16>
    %c80 = arith.constant 80 : index
    %c0_23 = arith.constant 0 : index
    %48 = vector.load %arg6[%c80, %c0_23] : memref<144x512xbf16, #tpu.memory_space<vmem>>, vector<16x256xbf16>
    tpu.vector_store %arg6[%c80, %c0_23], %47 {strides = array<i32>} : memref<144x512xbf16, #tpu.memory_space<vmem>>, vector<16x256xbf16>,
    %c0_24 = arith.constant 0 : index
    %c143 = arith.constant 143 : index
    %49 = vector.load %arg5[%c0_24, %c143] : memref<16x512xbf16, #tpu.memory_space<vmem>>, vector<16x256xbf16>
    %50 = arith.select %20, %49, %25 : vector<16x256xi1>, vector<16x256xbf16>
    %c96 = arith.constant 96 : index
    %c0_25 = arith.constant 0 : index
    %51 = vector.load %arg6[%c96, %c0_25] : memref<144x512xbf16, #tpu.memory_space<vmem>>, vector<16x256xbf16>
    tpu.vector_store %arg6[%c96, %c0_25], %50 {strides = array<i32>} : memref<144x512xbf16, #tpu.memory_space<vmem>>, vector<16x256xbf16>,
    %c0_26 = arith.constant 0 : index
    %c144 = arith.constant 144 : index
    %52 = vector.load %arg5[%c0_26, %c144] : memref<16x512xbf16, #tpu.memory_space<vmem>>, vector<16x256xbf16>
    %c112_27 = arith.constant 112 : index
    %c0_28 = arith.constant 0 : index
    %53 = vector.load %arg6[%c112_27, %c0_28] : memref<144x512xbf16, #tpu.memory_space<vmem>>, vector<16x256xbf16>
    tpu.vector_store %arg6[%c112_27, %c0_28], %52 {strides = array<i32>} : memref<144x512xbf16, #tpu.memory_space<vmem>>, vector<16x256xbf16>,
    %c0_29 = arith.constant 0 : index
    %c145 = arith.constant 145 : index
    %54 = vector.load %arg5[%c0_29, %c145] : memref<16x512xbf16, #tpu.memory_space<vmem>>, vector<16x256xbf16>
    %55 = arith.select %24, %54, %25 : vector<16x256xi1>, vector<16x256xbf16>
    %c128_30 = arith.constant 128 : index
    %c0_31 = arith.constant 0 : index
    %56 = vector.load %arg6[%c128_30, %c0_31] : memref<144x512xbf16, #tpu.memory_space<vmem>>, vector<16x256xbf16>
    tpu.vector_store %arg6[%c128_30, %c0_31], %55 {strides = array<i32>} : memref<144x512xbf16, #tpu.memory_space<vmem>>, vector<16x256xbf16>,
    %c1 = arith.constant 1 : index
    %c0_32 = arith.constant 0 : index
    %c0_33 = arith.constant 0 : index
    %57 = vector.load %arg1[%c1, %c0_32, %c0_33] : memref<2x16x256xf32, #tpu.memory_space<vmem>>, vector<1x16x256xf32>
    %58 = vector.shape_cast %57 : vector<1x16x256xf32> to vector<16x256xf32>
    %59 = arith.truncf %58 : vector<16x256xf32> to vector<16x256xbf16>
    %c0_34 = arith.constant 0 : index
    %c128_35 = arith.constant 128 : index
    %60 = vector.load %arg5[%c0_34, %c128_35] : memref<16x512xbf16, #tpu.memory_space<vmem>>, vector<16x256xbf16>
    tpu.vector_store %arg5[%c0_34, %c128_35], %59 {strides = array<i32>} : memref<16x512xbf16, #tpu.memory_space<vmem>>, vector<16x256xbf16>,
    %c0_36 = arith.constant 0 : index
    %c111_37 = arith.constant 111 : index
    %61 = vector.load %arg5[%c0_36, %c111_37] : memref<16x512xbf16, #tpu.memory_space<vmem>>, vector<16x256xbf16>
    %62 = arith.select %20, %61, %25 : vector<16x256xi1>, vector<16x256xbf16>
    %c0_38 = arith.constant 0 : index
    %c256 = arith.constant 256 : index
    %63 = vector.load %arg6[%c0_38, %c256] : memref<144x512xbf16, #tpu.memory_space<vmem>>, vector<16x256xbf16>
    tpu.vector_store %arg6[%c0_38, %c256], %62 {strides = array<i32>} : memref<144x512xbf16, #tpu.memory_space<vmem>>, vector<16x256xbf16>,
    %c0_39 = arith.constant 0 : index
    %c112_40 = arith.constant 112 : index
    %64 = vector.load %arg5[%c0_39, %c112_40] : memref<16x512xbf16, #tpu.memory_space<vmem>>, vector<16x256xbf16>
    %c16_41 = arith.constant 16 : index
    %c256_42 = arith.constant 256 : index
    %65 = vector.load %arg6[%c16_41, %c256_42] : memref<144x512xbf16, #tpu.memory_space<vmem>>, vector<16x256xbf16>
    tpu.vector_store %arg6[%c16_41, %c256_42], %64 {strides = array<i32>} : memref<144x512xbf16, #tpu.memory_space<vmem>>, vector<16x256xbf16>,
    %c0_43 = arith.constant 0 : index
    %c113_44 = arith.constant 113 : index
    %66 = vector.load %arg5[%c0_43, %c113_44] : memref<16x512xbf16, #tpu.memory_space<vmem>>, vector<16x256xbf16>
    %67 = arith.select %24, %66, %25 : vector<16x256xi1>, vector<16x256xbf16>
    %c32_45 = arith.constant 32 : index
    %c256_46 = arith.constant 256 : index
    %68 = vector.load %arg6[%c32_45, %c256_46] : memref<144x512xbf16, #tpu.memory_space<vmem>>, vector<16x256xbf16>
    tpu.vector_store %arg6[%c32_45, %c256_46], %67 {strides = array<i32>} : memref<144x512xbf16, #tpu.memory_space<vmem>>, vector<16x256xbf16>,
    %c0_47 = arith.constant 0 : index
    %c127_48 = arith.constant 127 : index
    %69 = vector.load %arg5[%c0_47, %c127_48] : memref<16x512xbf16, #tpu.memory_space<vmem>>, vector<16x256xbf16>
    %70 = arith.select %20, %69, %25 : vector<16x256xi1>, vector<16x256xbf16>
    %c48_49 = arith.constant 48 : index
    %c256_50 = arith.constant 256 : index
    %71 = vector.load %arg6[%c48_49, %c256_50] : memref<144x512xbf16, #tpu.memory_space<vmem>>, vector<16x256xbf16>
    tpu.vector_store %arg6[%c48_49, %c256_50], %70 {strides = array<i32>} : memref<144x512xbf16, #tpu.memory_space<vmem>>, vector<16x256xbf16>,
    %c0_51 = arith.constant 0 : index
    %c128_52 = arith.constant 128 : index
    %72 = vector.load %arg5[%c0_51, %c128_52] : memref<16x512xbf16, #tpu.memory_space<vmem>>, vector<16x256xbf16>
    %c64_53 = arith.constant 64 : index
    %c256_54 = arith.constant 256 : index
    %73 = vector.load %arg6[%c64_53, %c256_54] : memref<144x512xbf16, #tpu.memory_space<vmem>>, vector<16x256xbf16>
    tpu.vector_store %arg6[%c64_53, %c256_54], %72 {strides = array<i32>} : memref<144x512xbf16, #tpu.memory_space<vmem>>, vector<16x256xbf16>,
    %c0_55 = arith.constant 0 : index
    %c129_56 = arith.constant 129 : index
    %74 = vector.load %arg5[%c0_55, %c129_56] : memref<16x512xbf16, #tpu.memory_space<vmem>>, vector<16x256xbf16>
    %75 = arith.select %24, %74, %25 : vector<16x256xi1>, vector<16x256xbf16>
    %c80_57 = arith.constant 80 : index
    %c256_58 = arith.constant 256 : index
    %76 = vector.load %arg6[%c80_57, %c256_58] : memref<144x512xbf16, #tpu.memory_space<vmem>>, vector<16x256xbf16>
    tpu.vector_store %arg6[%c80_57, %c256_58], %75 {strides = array<i32>} : memref<144x512xbf16, #tpu.memory_space<vmem>>, vector<16x256xbf16>,
    %c0_59 = arith.constant 0 : index
    %c143_60 = arith.constant 143 : index
    %77 = vector.load %arg5[%c0_59, %c143_60] : memref<16x512xbf16, #tpu.memory_space<vmem>>, vector<16x256xbf16>
    %78 = arith.select %20, %77, %25 : vector<16x256xi1>, vector<16x256xbf16>
    %c96_61 = arith.constant 96 : index
    %c256_62 = arith.constant 256 : index
    %79 = vector.load %arg6[%c96_61, %c256_62] : memref<144x512xbf16, #tpu.memory_space<vmem>>, vector<16x256xbf16>
    tpu.vector_store %arg6[%c96_61, %c256_62], %78 {strides = array<i32>} : memref<144x512xbf16, #tpu.memory_space<vmem>>, vector<16x256xbf16>,
    %c0_63 = arith.constant 0 : index
    %c144_64 = arith.constant 144 : index
    %80 = vector.load %arg5[%c0_63, %c144_64] : memref<16x512xbf16, #tpu.memory_space<vmem>>, vector<16x256xbf16>
    %c112_65 = arith.constant 112 : index
    %c256_66 = arith.constant 256 : index
    %81 = vector.load %arg6[%c112_65, %c256_66] : memref<144x512xbf16, #tpu.memory_space<vmem>>, vector<16x256xbf16>
    tpu.vector_store %arg6[%c112_65, %c256_66], %80 {strides = array<i32>} : memref<144x512xbf16, #tpu.memory_space<vmem>>, vector<16x256xbf16>,
    %c0_67 = arith.constant 0 : index
    %c145_68 = arith.constant 145 : index
    %82 = vector.load %arg5[%c0_67, %c145_68] : memref<16x512xbf16, #tpu.memory_space<vmem>>, vector<16x256xbf16>
    %83 = arith.select %24, %82, %25 : vector<16x256xi1>, vector<16x256xbf16>
    %c128_69 = arith.constant 128 : index
    %c256_70 = arith.constant 256 : index
    %84 = vector.load %arg6[%c128_69, %c256_70] : memref<144x512xbf16, #tpu.memory_space<vmem>>, vector<16x256xbf16>
    tpu.vector_store %arg6[%c128_69, %c256_70], %83 {strides = array<i32>} : memref<144x512xbf16, #tpu.memory_space<vmem>>, vector<16x256xbf16>,
    %c0_71 = arith.constant 0 : index
    %c0_72 = arith.constant 0 : index
    %85 = vector.load %arg2[%c0_71, %c0_72] : memref<32x144xbf16, #tpu.memory_space<vmem>>, vector<32x144xbf16>
    %c0_73 = arith.constant 0 : index
    %c0_74 = arith.constant 0 : index
    %86 = vector.load %arg6[%c0_73, %c0_74] : memref<144x512xbf16, #tpu.memory_space<vmem>>, vector<144x512xbf16>
    %cst_75 = arith.constant dense<0.000000e+00> : vector<32x512xf32>
    %87 = tpu.matmul %85, %86, %cst_75 {dimension_numbers = #tpu.dot_dimension_numbers<[1], [0], [0], [1], [0, 0, 1, 1], [], []>} : vector<32x144xbf16>, vector<144x512xbf16>, vector<32x512xf32> -> vector<32x512xf32>
    %c0_76 = arith.constant 0 : index
    %c0_77 = arith.constant 0 : index
    %88 = vector.load %arg3[%c0_76, %c0_77] : memref<32x3xf32, #tpu.memory_space<vmem>>, vector<32x1xf32>
    %89 = vector.broadcast %88 : vector<32x1xf32> to vector<32x512xf32>
    %90 = arith.addf %87, %89 : vector<32x512xf32>
    %c0_78 = arith.constant 0 : index
    %c1_79 = arith.constant 1 : index
    %91 = vector.load %arg3[%c0_78, %c1_79] : memref<32x3xf32, #tpu.memory_space<vmem>>, vector<32x1xf32>
    %c0_80 = arith.constant 0 : index
    %c2 = arith.constant 2 : index
    %92 = vector.load %arg3[%c0_80, %c2] : memref<32x3xf32, #tpu.memory_space<vmem>>, vector<32x1xf32>
    %93 = vector.extract_strided_slice %90 {offsets = [0, 0], sizes = [32, 256], strides = [1, 1]} : vector<32x512xf32> to vector<32x256xf32>
    %cst_81 = arith.constant dense<0.000000e+00> : vector<32xf32>
    %94 = vector.multi_reduction <add>, %93, %cst_81 [1] : vector<32x256xf32> to vector<32xf32>
    %95 = vector.shape_cast %94 : vector<32xf32> to vector<32x1xf32>
    %96 = arith.mulf %93, %93 : vector<32x256xf32>
    %cst_82 = arith.constant dense<0.000000e+00> : vector<32xf32>
    %97 = vector.multi_reduction <add>, %96, %cst_82 [1] : vector<32x256xf32> to vector<32xf32>
    %98 = vector.shape_cast %97 : vector<32xf32> to vector<32x1xf32>
    %cst_83 = arith.constant 0.000000e+00 : f32
    %99 = vector.broadcast %cst_83 : f32 to vector<32x1xf32>
    %cst_84 = arith.constant 0.000000e+00 : f32
    %100 = vector.broadcast %cst_84 : f32 to vector<32x1xf32>
    %101 = vector.extract_strided_slice %95 {offsets = [0, 0], sizes = [16, 1], strides = [1, 1]} : vector<32x1xf32> to vector<16x1xf32>
    %102 = vector.shape_cast %101 : vector<16x1xf32> to vector<1x16x1xf32>
    %cst_85 = arith.constant dense<0.000000e+00> : vector<1xf32>
    %103 = vector.multi_reduction <add>, %102, %cst_85 [1, 2] : vector<1x16x1xf32> to vector<1xf32>
    %104 = vector.shape_cast %103 : vector<1xf32> to vector<1x1x1xf32>
    %105 = vector.extract %104[0, 0, 0] : f32 from vector<1x1x1xf32>
    %cst_86 = arith.constant 4.096000e+03 : f32
    %106 = arith.divf %105, %cst_86 : f32
    %107 = vector.extract_strided_slice %98 {offsets = [0, 0], sizes = [16, 1], strides = [1, 1]} : vector<32x1xf32> to vector<16x1xf32>
    %108 = vector.shape_cast %107 : vector<16x1xf32> to vector<1x16x1xf32>
    %cst_87 = arith.constant dense<0.000000e+00> : vector<1xf32>
    %109 = vector.multi_reduction <add>, %108, %cst_87 [1, 2] : vector<1x16x1xf32> to vector<1xf32>
    %110 = vector.shape_cast %109 : vector<1xf32> to vector<1x1x1xf32>
    %111 = vector.extract %110[0, 0, 0] : f32 from vector<1x1x1xf32>
    %cst_88 = arith.constant 4.096000e+03 : f32
    %112 = arith.divf %111, %cst_88 : f32
    %113 = arith.mulf %106, %106 : f32
    %114 = arith.subf %112, %113 : f32
    %cst_89 = arith.constant 0.000000e+00 : f32
    %115 = arith.maximumf %114, %cst_89 : f32
    %cst_90 = arith.constant 9.99999974E-6 : f32
    %116 = arith.addf %115, %cst_90 : f32
    %117 = math.rsqrt %116 : f32
    %c0_i32_91 = arith.constant 0 : i32
    %118 = vector.broadcast %c0_i32_91 : i32 to vector<32x1xi32>
    %119 = arith.cmpi sge, %26, %118 : vector<32x1xi32>
    %c16_i32_92 = arith.constant 16 : i32
    %120 = vector.broadcast %c16_i32_92 : i32 to vector<32x1xi32>
    %121 = arith.cmpi slt, %26, %120 : vector<32x1xi32>
    %122 = arith.andi %119, %121 : vector<32x1xi1>
    %123 = vector.broadcast %106 : f32 to vector<32x1xf32>
    %124 = arith.select %122, %123, %99 : vector<32x1xi1>, vector<32x1xf32>
    %125 = vector.broadcast %117 : f32 to vector<32x1xf32>
    %126 = arith.select %122, %125, %100 : vector<32x1xi1>, vector<32x1xf32>
    %127 = vector.extract_strided_slice %95 {offsets = [16, 0], sizes = [16, 1], strides = [1, 1]} : vector<32x1xf32> to vector<16x1xf32>
    %128 = vector.shape_cast %127 : vector<16x1xf32> to vector<1x16x1xf32>
    %cst_93 = arith.constant dense<0.000000e+00> : vector<1xf32>
    %129 = vector.multi_reduction <add>, %128, %cst_93 [1, 2] : vector<1x16x1xf32> to vector<1xf32>
    %130 = vector.shape_cast %129 : vector<1xf32> to vector<1x1x1xf32>
    %131 = vector.extract %130[0, 0, 0] : f32 from vector<1x1x1xf32>
    %cst_94 = arith.constant 4.096000e+03 : f32
    %132 = arith.divf %131, %cst_94 : f32
    %133 = vector.extract_strided_slice %98 {offsets = [16, 0], sizes = [16, 1], strides = [1, 1]} : vector<32x1xf32> to vector<16x1xf32>
    %134 = vector.shape_cast %133 : vector<16x1xf32> to vector<1x16x1xf32>
    %cst_95 = arith.constant dense<0.000000e+00> : vector<1xf32>
    %135 = vector.multi_reduction <add>, %134, %cst_95 [1, 2] : vector<1x16x1xf32> to vector<1xf32>
    %136 = vector.shape_cast %135 : vector<1xf32> to vector<1x1x1xf32>
    %137 = vector.extract %136[0, 0, 0] : f32 from vector<1x1x1xf32>
    %cst_96 = arith.constant 4.096000e+03 : f32
    %138 = arith.divf %137, %cst_96 : f32
    %139 = arith.mulf %132, %132 : f32
    %140 = arith.subf %138, %139 : f32
    %cst_97 = arith.constant 0.000000e+00 : f32
    %141 = arith.maximumf %140, %cst_97 : f32
    %cst_98 = arith.constant 9.99999974E-6 : f32
    %142 = arith.addf %141, %cst_98 : f32
    %143 = math.rsqrt %142 : f32
    %c16_i32_99 = arith.constant 16 : i32
    %144 = vector.broadcast %c16_i32_99 : i32 to vector<32x1xi32>
    %145 = arith.cmpi sge, %26, %144 : vector<32x1xi32>
    %c32_i32 = arith.constant 32 : i32
    %146 = vector.broadcast %c32_i32 : i32 to vector<32x1xi32>
    %147 = arith.cmpi slt, %26, %146 : vector<32x1xi32>
    %148 = arith.andi %145, %147 : vector<32x1xi1>
    %149 = vector.broadcast %132 : f32 to vector<32x1xf32>
    %150 = arith.select %148, %149, %124 : vector<32x1xi1>, vector<32x1xf32>
    %151 = vector.broadcast %143 : f32 to vector<32x1xf32>
    %152 = arith.select %148, %151, %126 : vector<32x1xi1>, vector<32x1xf32>
    %153 = vector.broadcast %150 : vector<32x1xf32> to vector<32x256xf32>
    %154 = arith.subf %93, %153 : vector<32x256xf32>
    %155 = arith.mulf %152, %91 : vector<32x1xf32>
    %156 = vector.broadcast %155 : vector<32x1xf32> to vector<32x256xf32>
    %157 = arith.mulf %154, %156 : vector<32x256xf32>
    %158 = vector.broadcast %92 : vector<32x1xf32> to vector<32x256xf32>
    %159 = arith.addf %157, %158 : vector<32x256xf32>
    %cst_100 = arith.constant 0.000000e+00 : f32
    %160 = vector.broadcast %cst_100 : f32 to vector<32x256xf32>
    %161 = arith.subf %160, %159 : vector<32x256xf32>
    %162 = math.exp %161 : vector<32x256xf32>
    %cst_101 = arith.constant 1.000000e+00 : f32
    %163 = vector.broadcast %cst_101 : f32 to vector<32x256xf32>
    %164 = arith.addf %163, %162 : vector<32x256xf32>
    %165 = tpu.reciprocal %164 {approx = true} : vector<32x256xf32> -> vector<32x256xf32>
    %166 = arith.mulf %159, %165 : vector<32x256xf32>
    %c0_102 = arith.constant 0 : index
    %c0_103 = arith.constant 0 : index
    %c0_104 = arith.constant 0 : index
    %167 = vector.load %arg4[%c0_102, %c0_103, %c0_104] : memref<2x32x256xf32, #tpu.memory_space<vmem>>, vector<1x32x256xf32>
    %168 = vector.shape_cast %167 : vector<1x32x256xf32> to vector<32x256xf32>
    %169 = vector.shape_cast %166 : vector<32x256xf32> to vector<1x32x256xf32>
    tpu.vector_store %arg4[%c0_102, %c0_103, %c0_104], %169 {strides = array<i32>} : memref<2x32x256xf32, #tpu.memory_space<vmem>>, vector<1x32x256xf32>,
    %170 = vector.extract_strided_slice %90 {offsets = [0, 256], sizes = [32, 256], strides = [1, 1]} : vector<32x512xf32> to vector<32x256xf32>
    %cst_105 = arith.constant dense<0.000000e+00> : vector<32xf32>
    %171 = vector.multi_reduction <add>, %170, %cst_105 [1] : vector<32x256xf32> to vector<32xf32>
    %172 = vector.shape_cast %171 : vector<32xf32> to vector<32x1xf32>
    %173 = arith.mulf %170, %170 : vector<32x256xf32>
    %cst_106 = arith.constant dense<0.000000e+00> : vector<32xf32>
    %174 = vector.multi_reduction <add>, %173, %cst_106 [1] : vector<32x256xf32> to vector<32xf32>
    %175 = vector.shape_cast %174 : vector<32xf32> to vector<32x1xf32>
    %cst_107 = arith.constant 0.000000e+00 : f32
    %176 = vector.broadcast %cst_107 : f32 to vector<32x1xf32>
    %cst_108 = arith.constant 0.000000e+00 : f32
    %177 = vector.broadcast %cst_108 : f32 to vector<32x1xf32>
    %178 = vector.extract_strided_slice %172 {offsets = [0, 0], sizes = [16, 1], strides = [1, 1]} : vector<32x1xf32> to vector<16x1xf32>
    %179 = vector.shape_cast %178 : vector<16x1xf32> to vector<1x16x1xf32>
    %cst_109 = arith.constant dense<0.000000e+00> : vector<1xf32>
    %180 = vector.multi_reduction <add>, %179, %cst_109 [1, 2] : vector<1x16x1xf32> to vector<1xf32>
    %181 = vector.shape_cast %180 : vector<1xf32> to vector<1x1x1xf32>
    %182 = vector.extract %181[0, 0, 0] : f32 from vector<1x1x1xf32>
    %cst_110 = arith.constant 4.096000e+03 : f32
    %183 = arith.divf %182, %cst_110 : f32
    %184 = vector.extract_strided_slice %175 {offsets = [0, 0], sizes = [16, 1], strides = [1, 1]} : vector<32x1xf32> to vector<16x1xf32>
    %185 = vector.shape_cast %184 : vector<16x1xf32> to vector<1x16x1xf32>
    %cst_111 = arith.constant dense<0.000000e+00> : vector<1xf32>
    %186 = vector.multi_reduction <add>, %185, %cst_111 [1, 2] : vector<1x16x1xf32> to vector<1xf32>
    %187 = vector.shape_cast %186 : vector<1xf32> to vector<1x1x1xf32>
    %188 = vector.extract %187[0, 0, 0] : f32 from vector<1x1x1xf32>
    %cst_112 = arith.constant 4.096000e+03 : f32
    %189 = arith.divf %188, %cst_112 : f32
    %190 = arith.mulf %183, %183 : f32
    %191 = arith.subf %189, %190 : f32
    %cst_113 = arith.constant 0.000000e+00 : f32
    %192 = arith.maximumf %191, %cst_113 : f32
    %cst_114 = arith.constant 9.99999974E-6 : f32
    %193 = arith.addf %192, %cst_114 : f32
    %194 = math.rsqrt %193 : f32
    %c0_i32_115 = arith.constant 0 : i32
    %195 = vector.broadcast %c0_i32_115 : i32 to vector<32x1xi32>
    %196 = arith.cmpi sge, %26, %195 : vector<32x1xi32>
    %c16_i32_116 = arith.constant 16 : i32
    %197 = vector.broadcast %c16_i32_116 : i32 to vector<32x1xi32>
    %198 = arith.cmpi slt, %26, %197 : vector<32x1xi32>
    %199 = arith.andi %196, %198 : vector<32x1xi1>
    %200 = vector.broadcast %183 : f32 to vector<32x1xf32>
    %201 = arith.select %199, %200, %176 : vector<32x1xi1>, vector<32x1xf32>
    %202 = vector.broadcast %194 : f32 to vector<32x1xf32>
    %203 = arith.select %199, %202, %177 : vector<32x1xi1>, vector<32x1xf32>
    %204 = vector.extract_strided_slice %172 {offsets = [16, 0], sizes = [16, 1], strides = [1, 1]} : vector<32x1xf32> to vector<16x1xf32>
    %205 = vector.shape_cast %204 : vector<16x1xf32> to vector<1x16x1xf32>
    %cst_117 = arith.constant dense<0.000000e+00> : vector<1xf32>
    %206 = vector.multi_reduction <add>, %205, %cst_117 [1, 2] : vector<1x16x1xf32> to vector<1xf32>
    %207 = vector.shape_cast %206 : vector<1xf32> to vector<1x1x1xf32>
    %208 = vector.extract %207[0, 0, 0] : f32 from vector<1x1x1xf32>
    %cst_118 = arith.constant 4.096000e+03 : f32
    %209 = arith.divf %208, %cst_118 : f32
    %210 = vector.extract_strided_slice %175 {offsets = [16, 0], sizes = [16, 1], strides = [1, 1]} : vector<32x1xf32> to vector<16x1xf32>
    %211 = vector.shape_cast %210 : vector<16x1xf32> to vector<1x16x1xf32>
    %cst_119 = arith.constant dense<0.000000e+00> : vector<1xf32>
    %212 = vector.multi_reduction <add>, %211, %cst_119 [1, 2] : vector<1x16x1xf32> to vector<1xf32>
    %213 = vector.shape_cast %212 : vector<1xf32> to vector<1x1x1xf32>
    %214 = vector.extract %213[0, 0, 0] : f32 from vector<1x1x1xf32>
    %cst_120 = arith.constant 4.096000e+03 : f32
    %215 = arith.divf %214, %cst_120 : f32
    %216 = arith.mulf %209, %209 : f32
    %217 = arith.subf %215, %216 : f32
    %cst_121 = arith.constant 0.000000e+00 : f32
    %218 = arith.maximumf %217, %cst_121 : f32
    %cst_122 = arith.constant 9.99999974E-6 : f32
    %219 = arith.addf %218, %cst_122 : f32
    %220 = math.rsqrt %219 : f32
    %c16_i32_123 = arith.constant 16 : i32
    %221 = vector.broadcast %c16_i32_123 : i32 to vector<32x1xi32>
    %222 = arith.cmpi sge, %26, %221 : vector<32x1xi32>
    %c32_i32_124 = arith.constant 32 : i32
    %223 = vector.broadcast %c32_i32_124 : i32 to vector<32x1xi32>
    %224 = arith.cmpi slt, %26, %223 : vector<32x1xi32>
    %225 = arith.andi %222, %224 : vector<32x1xi1>
    %226 = vector.broadcast %209 : f32 to vector<32x1xf32>
    %227 = arith.select %225, %226, %201 : vector<32x1xi1>, vector<32x1xf32>
    %228 = vector.broadcast %220 : f32 to vector<32x1xf32>
    %229 = arith.select %225, %228, %203 : vector<32x1xi1>, vector<32x1xf32>
    %230 = vector.broadcast %227 : vector<32x1xf32> to vector<32x256xf32>
    %231 = arith.subf %170, %230 : vector<32x256xf32>
    %232 = arith.mulf %229, %91 : vector<32x1xf32>
    %233 = vector.broadcast %232 : vector<32x1xf32> to vector<32x256xf32>
    %234 = arith.mulf %231, %233 : vector<32x256xf32>
    %235 = vector.broadcast %92 : vector<32x1xf32> to vector<32x256xf32>
    %236 = arith.addf %234, %235 : vector<32x256xf32>
    %cst_125 = arith.constant 0.000000e+00 : f32
    %237 = vector.broadcast %cst_125 : f32 to vector<32x256xf32>
    %238 = arith.subf %237, %236 : vector<32x256xf32>
    %239 = math.exp %238 : vector<32x256xf32>
    %cst_126 = arith.constant 1.000000e+00 : f32
    %240 = vector.broadcast %cst_126 : f32 to vector<32x256xf32>
    %241 = arith.addf %240, %239 : vector<32x256xf32>
    %242 = tpu.reciprocal %241 {approx = true} : vector<32x256xf32> -> vector<32x256xf32>
    %243 = arith.mulf %236, %242 : vector<32x256xf32>
    %c1_127 = arith.constant 1 : index
    %c0_128 = arith.constant 0 : index
    %c0_129 = arith.constant 0 : index
    %244 = vector.load %arg4[%c1_127, %c0_128, %c0_129] : memref<2x32x256xf32, #tpu.memory_space<vmem>>, vector<1x32x256xf32>
    %245 = vector.shape_cast %244 : vector<1x32x256xf32> to vector<32x256xf32>
    %246 = vector.shape_cast %243 : vector<32x256xf32> to vector<1x32x256xf32>
    tpu.vector_store %arg4[%c1_127, %c0_128, %c0_129], %246 {strides = array<i32>} : memref<2x32x256xf32, #tpu.memory_space<vmem>>, vector<1x32x256xf32>,
    return
  }
  func.func @transform_0(%arg0: i32) -> (i32, i32, i32) {
    %c0_i32 = arith.constant 0 : i32
    %c0_i32_0 = arith.constant 0 : i32
    %c0_i32_1 = arith.constant 0 : i32
    return %arg0, %c0_i32, %c0_i32_0 : i32, i32, i32
  }
  func.func @transform_1(%arg0: i32) -> (i32, i32) {
    %c0_i32 = arith.constant 0 : i32
    %c0_i32_0 = arith.constant 0 : i32
    %c0_i32_1 = arith.constant 0 : i32
    return %c0_i32, %c0_i32_0 : i32, i32
  }
  func.func @transform_2(%arg0: i32) -> (i32, i32) {
    %c0_i32 = arith.constant 0 : i32
    %c0_i32_0 = arith.constant 0 : i32
    %c0_i32_1 = arith.constant 0 : i32
    return %c0_i32, %c0_i32_0 : i32, i32
  }
  func.func @transform_3(%arg0: i32) -> (i32, i32, i32) {
    %c0_i32 = arith.constant 0 : i32
    %c0_i32_0 = arith.constant 0 : i32
    %c0_i32_1 = arith.constant 0 : i32
    return %arg0, %c0_i32, %c0_i32_0 : i32, i32, i32
  }
}

</mosaic_0001>

<bundles_post_ra>
// kernel: mgma_convsc_forward.1
= control target key start
LH: loop header
LB: loop body
LE: loop exit
PB: predicated region body
PF: predicated region fallthrough
CT: control target
= control target key end

     0   :  { %v17_v0 = vlaneseq  ;;  %v2113_v1 = vmov 0   ;;  %s2115_s28 = smov 15   ;;  %s2116_s29 = smov 111   ;;  %vm3028_vm6 = vcmask 908288   ;;  %vm3030_vm7 = vcmask 1039360   ;;  %s3024_s0 = inlined_call_operand.vmem [shape: f32[2,16,256], index: 0, kind: input, shape index: {}]   ;;  %s3025_s2 = inlined_call_operand.vmem [shape: f32[32,3], index: 2, kind: input, shape index: {}]   ;;  %s3026_s1 = inlined_call_operand.vmem [shape: bf16[32,144], index: 1, kind: input, shape index: {}]   ;;  %s3027_s3 = inlined_call_operand.vmem [shape: f32[2,32,256], index: 3, kind: output, shape index: {}]  }
   0x1   :  { %61 = vst [vmem:[#allocation2] sm:$0xff] %v2113_v1  ;;  %v65_v2 = vld [vmem:[%s3024_s0] sm:$0xff]  ;;  %v66_v3 = vld [vmem:[%s3024_s0 + $0x8] sm:$0xff]  ;;  %2021 = vset.pattern.permute.xlu0 %v2113_v1  ;;  %2022 = vset.pattern.permute.xlu1 %v2113_v1  ;;  %v67_v6 = vld [vmem:[%s3024_s0 + $0x10] sm:$0xff]  ;;  %s2117_s30 = smov 113   ;;  %s2118_s4 = smov 1   ;;  %v2227_v37 = vunpack.c.l.b16 %v2113_v1  ;;  %v2230_v38 = vunpack.c.h.b16 %v2113_v1 }
   0x2   :  { %v18_v4 = vand.u32 127, %v17_v0  ;;  %62 = vst [vmem:[#allocation2 + $0x8] sm:$0xff] %v2113_v1  ;;  %2028 = vset.pattern.permute.xlu2 %v2113_v1  ;;  %v2158_v5 = vpack.c.bf16 %v66_v3, %v65_v2  ;;  %v68_v7 = vld [vmem:[%s3024_s0 + $0x18] sm:$0xff]  ;;  %v1718_v10 = vld [vmem:[%s3024_s0 + $0x20] sm:$0xff]  ;;  %v1719_v11 = vld [vmem:[%s3024_s0 + $0x28] sm:$0xff]  ;;  %s2119_s5 = smov 17  }
   0x3   :  { %63 = vst [vmem:[#allocation2 + $0x10] sm:$0xff] %v2113_v1  ;;  %v2173_v12 = vpack.c.bf16 %v68_v7, %v67_v6  ;;  %v1720_v13 = vld [vmem:[%s3024_s0 + $0x30] sm:$0xff]  ;;  %v1721_v14 = vld [vmem:[%s3024_s0 + $0x38] sm:$0xff]  ;;  %v2183_v16 = vpack.c.bf16 %v1719_v11, %v1718_v10  ;;  %s2114_s0 = smov 127   ;;  %s2120_s6 = smov 112   ;;  %vm3029_vm8 = vcmask 121856  }
   0x4   :  { %v19_v8 = vadd.s32 128, %v18_v4  ;;  %v24_v9 = vand.u32 15, %v18_v4  ;;  %64 = vst [vmem:[#allocation2 + $0x18] sm:$0xff] %v2113_v1  ;;  %v2186_v17 = vpack.c.bf16 %v1721_v14, %v1720_v13  ;;  %s2121_s7 = smov 16   ;;  %vm166_vm9 = vcmask 924672   ;;  %v748_v10 = vld [vmem:[%s3025_s2 + $0x8] sm:$0xff] }
   0x5   :  { %71 = vst [vmem:[#allocation2 + $0x4] sm:$0xff] %v2158_v5  ;;  %s2124_s10 = smov 0.0  }
   0x6   :  { %v31_v15 = vand.u32 15, %v19_v8  ;;  %vm44_vm0 = vcmp.ne.s32.totalorder %v24_v9, 0  ;;  %265 = vst [vmem:[#allocation3 + $0x80] sm:$0xff] %v2158_v5  ;;  %vm50_vm3 = vcmp.ne.s32.totalorder %v24_v9, 15 }
   0x7   :  { %72 = vst [vmem:[#allocation2 + $0x14] sm:$0xff] %v2173_v12 }
   0x8   :  { %vm45_vm1 = vcmp.ne.s32.totalorder %v31_v15, 0  ;;  %266 = vst [vmem:[#allocation3 + $0x90] sm:$0xff] %v2173_v12  ;;  %vm51_vm4 = vcmp.ne.s32.totalorder %v31_v15, 15 }
   0x9   :  { %vm77_vm2 = vmpackc.low %vm45_vm1, %vm44_vm0  ;;  %581 = vst [vmem:[#allocation3 + $0x88] sm:$0xff] %v2183_v16  ;;  %v368_v20 = vld [vmem:[#allocation2 + $0xc] sm:$0xf]  ;;  %vm3032_vm1 = vcmask 7168  }
   0xa   :  { %v78_v18 = vsel %vm77_vm2, 65537, %v2113_v1  ;;  %582 = vst [vmem:[#allocation3 + $0x98] sm:$0xff] %v2186_v17  ;;  %vm161_vm5 = vmpackc.low %vm51_vm4, %vm50_vm3  ;;  %v318_v57 = vld [vmem:[#allocation2 + $0xc] sm:$0xf] }
   0xb   :  { %215 = vrot.lane.b32.xlu1 %v78_v18, %s2114_s0  ;;  %321 = vrot.lane.b32.xlu0 %v78_v18, %s2115_s28  ;;  %v162_v19 = vsel %vm161_vm5, 65537, %v2113_v1  ;;  %v370_v21 = vld [vmem:[#allocation2 + $0x1c] sm:$0xf] }
   0xc   :  { %79 = vrot.lane.b32.xlu2 %v78_v18, %s2116_s29  ;;  %v1986_v22 = vpack.i.bf16 %v370_v21, %v368_v20  ;;  %v129_v24 = vld [vmem:[#allocation2 + $0x8] sm:$0xf]  ;;  %v2206_v25 = vld [vmem:[#allocation2] sm:$0xff]  ;;  %v320_v58 = vld [vmem:[#allocation2 + $0x1c] sm:$0xf] }
   0xd   :  { %v2211_v28 = vld [vmem:[#allocation2 + $0x8] sm:$0xf]  ;;  %v399_v3 = vld [vmem:[#allocation2 + $0x1c] sm:$0xf] }
   0xe   :  { %v2204_v23 = vld [vmem:[#allocation2 + $0x10] sm:$0xff]  ;;  %v214_v26 = vld [vmem:[#allocation2 + $0x18] sm:$0xf]  ;;  %v2215_v29 = vld [vmem:[#allocation2 + $0x8] sm:$0xf] }
   0xf   :  { %v131_v27 = vld [vmem:[#allocation2 + $0x18] sm:$0xf]  ;;  %v2221_v32 = vld [vmem:[#allocation2 + $0x8] sm:$0xf] }
  0x10   :  { %v2217_v30 = vld [vmem:[#allocation2 + $0x18] sm:$0xf]  ;;  %453 = vst [vmem:[#allocation2 + $0x4] sm:$0xff] %v2183_v16 }
  0x11   :  { %v2219_v31 = vld [vmem:[#allocation2 + $0x18] sm:$0xf] }
  0x12   :  { %454 = vst [vmem:[#allocation2 + $0x14] sm:$0xff] %v2186_v17 }
  0x13   :  { %163 = vrot.lane.b32.xlu1 %v162_v19, %s2117_s30  ;;  %271 = vrot.lane.b32.xlu0 %v162_v19, %s2118_s4 }
  0x14   :  { %400 = vrot.lane.b32.xlu2 %v162_v19, %s2119_s5 }
  0x19   :  { %v550_v2 = vld [vmem:[#allocation2 + $0x18] sm:$0xf] }
  0x1b   :  { %1987 = vrot.lane.b32.xlu1 %v1986_v22, %s2120_s6  ;;  %375 = vrot.lane.b32.xlu0 %v2158_v5, %s2120_s6  ;;  %v518_v22 = vld [vmem:[#allocation2 + $0x18] sm:$0xf] }
  0x1c   :  { %379 = vrot.lane.b32.xlu2 %v2173_v12, %s2120_s6 }
  0x23   :  { %140 = vrot.lane.b32.xlu1 %v2204_v23, %s2121_s7  ;;  %138 = vrot.lane.b32.xlu0 %v129_v24, %s2121_s7 }
  0x24   :  { %136 = vrot.lane.b32.xlu2 %v2206_v25, %s2121_s7 }
  0x2c   :  { %142 = vrot.lane.b32.xlu2 %v131_v27, %s2121_s7 }
  0x66   :  { %v80_v33 = vpop.permute.xlu2 %79 }
  0x67   :  { %v81_v34 = vrot.slane %v80_v33, 4 }
  0x69   :  { %v83_v41 = vsel %vm3028_vm6, %v81_v34, %v80_v33  ;;  %v91_v42 = vunpack.c.l.b16 %v81_v34  ;;  %v92_v43 = vunpack.c.h.b16 %v81_v34 }
  0x6a   :  { %v84_v59 = vunpack.c.l.b16 %v83_v41  ;;  %v85_v60 = vunpack.c.h.b16 %v83_v41 }
  0x6b   :  { %vm2271_vm5 = vcmp.ne.s32.totalorder %v91_v42, %v2227_v37 }
  0x6e   :  { %v401_v62 = vpop.permute.xlu2 %400 }
  0x6f   :  { %v402_v63 = vrot.slane %v401_v62, 4 }
  0x7d   :  { %v216_v35 = vpop.permute.xlu1 %215  ;;  %v322_v36 = vpop.permute.xlu0 %321 }
  0x7e   :  { %v217_v39 = vrot.slane %v216_v35, 4  ;;  %v323_v40 = vrot.slane %v322_v36, 4 }
  0x80   :  { %v219_v44 = vsel %vm3030_vm7, %v217_v39, %v216_v35  ;;  %v227_v45 = vunpack.c.l.b16 %v217_v39  ;;  %v228_v46 = vunpack.c.h.b16 %v217_v39  ;;  %v324_v47 = vsel %vm3029_vm8, %v323_v40, %v322_v36 }
  0x81   :  { %v220_v48 = vunpack.c.l.b16 %v219_v44  ;;  %v221_v49 = vunpack.c.h.b16 %v219_v44  ;;  %v325_v50 = vunpack.c.l.b16 %v324_v47  ;;  %v326_v51 = vunpack.c.h.b16 %v324_v47  ;;  %v268_v44 = vld [vmem:[#allocation2 + $0xc] sm:$0xf] }
  0x82   :  { %v332_v52 = vunpack.c.l.b16 %v323_v40  ;;  %v333_v53 = vunpack.c.h.b16 %v323_v40  ;;  %vm231_vm10 = vcmp.ne.s32.totalorder %v227_v45, %v2227_v37  ;;  %vm232_vm11 = vcmp.ne.s32.totalorder %v228_v46, %v2230_v38  ;;  %v270_v45 = vld [vmem:[#allocation2 + $0x1c] sm:$0xf] }
  0x83   :  { %vm2238_vm12 = vcmp.ne.s32.totalorder %v220_v48, %v2227_v37  ;;  %vm2243_vm13 = vcmp.ne.s32.totalorder %v221_v49, %v2230_v38  ;;  %vm2247_vm14 = vmpackc.low %vm232_vm11, %vm231_vm10  ;;  %vm2256_vm2 = vcmp.ne.s32.totalorder %v325_v50, %v2227_v37  ;;  %vm2261_vm3 = vcmp.ne.s32.totalorder %v326_v51, %v2230_v38  ;;  %v676_v51 = vld [vmem:[#allocation2 + $0xc] sm:$0xf] }
  0x84   :  { %vm336_vm15 = vcmp.ne.s32.totalorder %v332_v52, %v2227_v37  ;;  %vm337_vm0 = vcmp.ne.s32.totalorder %v333_v53, %v2230_v38  ;;  %v237_v61 = vsel %vm2247_vm14, %v214_v26, 0  ;;  %vm2276_vm10 = vcmp.ne.s32.totalorder %v92_v43, %v2230_v38  ;;  %vm2288_vm11 = vmpackc.low %vm2243_vm13, %vm2238_vm12 }
  0x85   :  { %v164_v0 = vpop.permute.xlu1 %163  ;;  %v272_v1 = vpop.permute.xlu0 %271  ;;  %248 = vrot.lane.b32.xlu0 %v237_v61, %s2118_s4  ;;  %vm2266_vm4 = vmpackc.low %vm337_vm0, %vm336_vm15  ;;  %vm2293_vm15 = vcmp.ne.s32.totalorder %v84_v59, %v2227_v37  ;;  %vm2298_vm0 = vcmp.ne.s32.totalorder %v85_v60, %v2230_v38  ;;  %v236_v15 = vsel %vm2288_vm11, %v2204_v23, 0  ;;  %v235_v59 = vsel %vm2247_vm14, %v2215_v29, 0 }
  0x86   :  { %v165_v6 = vrot.slane %v164_v0, 4  ;;  %v273_v7 = vrot.slane %v272_v1, 4  ;;  %v340_v8 = vsel %vm2266_vm4, %v318_v57, 0  ;;  %v342_v9 = vsel %vm2266_vm4, %v320_v58, 0  ;;  %vm2311_vm12 = vmpackc.low %vm2261_vm3, %vm2256_vm2 }
  0x87   :  { %v1991_v11 = vpack.i.bf16 %v342_v9, %v340_v8  ;;  %vm2320_vm13 = vmpackc.low %vm2276_vm10, %vm2271_vm5  ;;  %v339_v42 = vsel %vm2311_vm12, %v2158_v5, 0  ;;  %v234_v60 = vsel %vm2288_vm11, %v2206_v25, 0  ;;  %v412_v29 = vunpack.c.h.b16 %v402_v63 }
  0x88   :  { %v167_v18 = vsel %vm166_vm9, %v165_v6, %v164_v0  ;;  %v175_v19 = vunpack.c.l.b16 %v165_v6  ;;  %v176_v20 = vunpack.c.h.b16 %v165_v6  ;;  %v274_v21 = vsel %vm3032_vm1, %v273_v7, %v272_v1  ;;  %vm2330_vm6 = vmpackc.low %vm2298_vm0, %vm2293_vm15  ;;  %v397_v1 = vld [vmem:[#allocation2 + $0xc] sm:$0xf] }
  0x89   :  { %v168_v24 = vunpack.c.l.b16 %v167_v18  ;;  %v169_v26 = vunpack.c.h.b16 %v167_v18  ;;  %v275_v27 = vunpack.c.l.b16 %v274_v21  ;;  %v276_v33 = vunpack.c.h.b16 %v274_v21  ;;  %1992 = vrot.lane.b32.xlu1 %v1991_v11, %s2117_s30  ;;  %v650_v18 = vld [vmem:[#allocation2 + $0x1c] sm:$0xf] }
  0x8a   :  { %v282_v35 = vunpack.c.l.b16 %v273_v7  ;;  %v283_v36 = vunpack.c.h.b16 %v273_v7  ;;  %vm179_vm2 = vcmp.ne.s32.totalorder %v175_v19, %v2227_v37  ;;  %vm180_vm3 = vcmp.ne.s32.totalorder %v176_v20, %v2230_v38  ;;  %v616_v20 = vld [vmem:[#allocation2 + $0xc] sm:$0xf]  ;;  %v618_v21 = vld [vmem:[#allocation2 + $0x1c] sm:$0xf] }
  0x8b   :  { %vm2335_vm8 = vcmp.ne.s32.totalorder %v168_v24, %v2227_v37  ;;  %vm2340_vm5 = vcmp.ne.s32.totalorder %v169_v26, %v2230_v38  ;;  %vm2347_vm10 = vmpackc.low %vm180_vm3, %vm179_vm2  ;;  %vm2360_vm7 = vcmp.ne.s32.totalorder %v275_v27, %v2227_v37  ;;  %vm280_vm3 = vcmp.ne.s32.totalorder %v276_v33, %v2230_v38 }
  0x8c   :  { %vm286_vm15 = vcmp.ne.s32.totalorder %v282_v35, %v2227_v37  ;;  %vm287_vm0 = vcmp.ne.s32.totalorder %v283_v36, %v2230_v38  ;;  %v183_v46 = vsel %vm2347_vm10, %v2211_v28, 0  ;;  %v185_v47 = vsel %vm2347_vm10, %v2217_v30, 0 }
  0x8d   :  { %347 = vrot.lane.b32.xlu0 %v339_v42, %s2117_s30  ;;  %192 = vrot.lane.b32.xlu2 %v183_v46, %s2115_s28  ;;  %vm2366_vm2 = vmpackc.low %vm287_vm0, %vm286_vm15  ;;  %v101_v28 = vsel %vm2320_vm13, %v2219_v31, 0  ;;  %v100_v31 = vsel %vm2330_vm6, %v2204_v23, 0  ;;  %v99_v55 = vsel %vm2320_vm13, %v2221_v32, 0  ;;  %v98_v57 = vsel %vm2330_vm6, %v2206_v25, 0  ;;  %v1988_v26 = vpop.permute.xlu1 %1987  ;;  %v586_v46 = vld [vmem:[#allocation2 + $0x1c] sm:$0xf] }
  0x8e   :  { %v290_v30 = vsel %vm2366_vm2, %v268_v44, 0  ;;  %v292_v50 = vsel %vm2366_vm2, %v270_v45, 0  ;;  %vm2382_vm15 = vmpackc.low %vm2340_vm5, %vm2335_vm8  ;;  %v341_v32 = vsel %vm2311_vm12, %v2173_v12, 0  ;;  %v411_v0 = vunpack.c.l.b16 %v402_v63  ;;  %v584_v45 = vld [vmem:[#allocation2 + $0xc] sm:$0xf] }
  0x8f   :  { %v1996_v52 = vpack.i.bf16 %v292_v50, %v290_v30  ;;  %v182_v53 = vsel %vm2382_vm15, %v2206_v25, 0  ;;  %v184_v54 = vsel %vm2382_vm15, %v2204_v23, 0  ;;  %vm2404_vm8 = vmpackc.low %vm280_vm3, %vm2360_vm7  ;;  %vm3031_vm7 = vcmask 138240  }
  0x90   :  { %v289_v23 = vsel %vm2404_vm8, %v2158_v5, 0  ;;  %v291_v61 = vsel %vm2404_vm8, %v2173_v12, 0  ;;  %vm415_vm5 = vcmp.ne.s32.totalorder %v411_v0, %v2227_v37  ;;  %vm416_vm0 = vcmp.ne.s32.totalorder %v412_v29, %v2230_v38 }
  0x91   :  { %1997 = vrot.lane.b32.xlu1 %v1996_v52, %s2114_s0  ;;  %v403_v25 = vsel %vm3031_vm7, %v402_v63, %v401_v62  ;;  %vm2435_vm3 = vmpackc.low %vm416_vm0, %vm415_vm5  ;;  %v620_v24 = vsel %vm2266_vm4, %v616_v20, 0  ;;  %v1990_v33 = vunpack.i.h.bf16 %v1988_v26  ;;  %v1989_v35 = vunpack.i.l.bf16 %v1988_v26  ;;  %v549_v20 = vld [vmem:[#allocation2 + $0x10] sm:$0xff] }
  0x92   :  { %v404_v6 = vunpack.c.l.b16 %v403_v25  ;;  %v405_v7 = vunpack.c.h.b16 %v403_v25  ;;  %v419_v8 = vsel %vm2435_vm3, %v397_v1, 0  ;;  %v421_v9 = vsel %vm2435_vm3, %v399_v3, 0 }
  0x93   :  { %v2001_v11 = vpack.i.bf16 %v421_v9, %v419_v8  ;;  %v386_v42 = vrot.slane %v1990_v33, 4  ;;  %v384_v44 = vrot.slane %v1989_v35, 4  ;;  %v554_v50 = vsel %vm2247_vm14, %v550_v2, 0  ;;  %v678_v33 = vld [vmem:[#allocation2 + $0x1c] sm:$0xf] }
  0x94   :  { %vm408_vm7 = vcmp.ne.s32.totalorder %v404_v6, %v2227_v37  ;;  %vm409_vm1 = vcmp.ne.s32.totalorder %v405_v7, %v2230_v38  ;;  %v380_v38 = vpop.permute.xlu2 %379  ;;  %v590_v52 = vsel %vm2366_vm2, %v586_v46, 0  ;;  %v619_v49 = vsel %vm2311_vm12, %v2183_v16, 0  ;;  %v488_v35 = vld [vmem:[#allocation2 + $0x8] sm:$0xf] }
  0x95   :  { %297 = vrot.lane.b32.xlu0 %v289_v23, %s2114_s0  ;;  %351 = vrot.lane.b32.xlu2 %v341_v32, %s2117_s30  ;;  %vm2448_vm5 = vmpackc.low %vm409_vm1, %vm408_vm7  ;;  %v385_v27 = vrot.slane %v380_v38, 4  ;;  %vm118_vm1 = vcmask 1043456   ;;  %vm388_vm7 = vcmask 916480   ;;  %v587_v56 = vsel %vm2404_vm8, %v2183_v16, 0 }
  0x96   :  { %v418_v14 = vsel %vm2448_vm5, %v2158_v5, 0  ;;  %v420_v19 = vsel %vm2448_vm5, %v2173_v12, 0  ;;  %v622_v5 = vsel %vm2266_vm4, %v618_v21, 0  ;;  %v376_v12 = vpop.permute.xlu0 %375  ;;  %vm149_vm4 = vcmask 130048  }
  0x97   :  { %v2011_v36 = vpack.i.bf16 %v622_v5, %v620_v24  ;;  %v383_v40 = vrot.slane %v376_v12, 4  ;;  %v553_v58 = vsel %vm2288_vm11, %v549_v20, 0  ;;  %v521_v24 = vsel %vm2382_vm15, %v549_v20, 0  ;;  %v747_v5 = vld [vmem:[%s3025_s2] sm:$0xff] }
  0x98   :  { %v681_v46 = vsel %vm2448_vm5, %v2186_v17, 0 }
  0x99   :  { %244 = vrot.lane.b32.xlu1 %v235_v59, %s2118_s4  ;;  %v387_v48 = vsel %vm118_vm1, %v383_v40, %v384_v44  ;;  %v548_v59 = vld [vmem:[#allocation2 + $0x8] sm:$0xf]  ;;  %v680_v40 = vsel %vm2435_vm3, %v676_v51, 0  ;;  %v1806_v51 = vld [vmem:[#allocation3 + $0x90] sm:$0xf0] }
  0x9a   :  { %v389_v30 = vsel %vm388_vm7, %v376_v12, %v387_v48  ;;  %v552_v9 = vsel %vm2247_vm14, %v548_v59, 0  ;;  %vm3079_vm14 = vcmask 7168  }
  0x9b   :  { %394 = vst [vmem:[#allocation3 + $0xe0] sm:$0xff] %v389_v30 }
  0x9c   :  { %v137_v41 = vpop.permute.xlu2 %136 }
  0x9d   :  { %242 = vrot.lane.b32.xlu0 %v234_v60, %s2118_s4  ;;  %301 = vrot.lane.b32.xlu2 %v291_v61, %s2114_s0  ;;  %v144_v23 = vrot.slane %v137_v41, 4  ;;  %v141_v60 = vpop.permute.xlu1 %140 }
  0x9e   :  { %v139_v61 = vpop.permute.xlu0 %138  ;;  %v146_v62 = vrot.slane %v141_v60, 4 }
  0x9f   :  { %v145_v63 = vrot.slane %v139_v61, 4  ;;  %v461_v61 = vsel %vm2330_vm6, %v549_v20, 0 }
  0xa1   :  { %196 = vrot.lane.b32.xlu1 %v185_v47, %s2115_s28  ;;  %v390_v47 = vsel %vm118_vm1, %v385_v27, %v386_v42  ;;  %v148_v7 = vsel %vm118_vm1, %v144_v23, %v145_v63  ;;  %v490_v27 = vld [vmem:[#allocation2 + $0x18] sm:$0xf] }
  0xa2   :  { %v1852_v0 = vld [vmem:[#allocation3 + $0xe0] sm:$0xf]  ;;  %v1930_v1 = vld [vmem:[#allocation3 + $0xe4] sm:$0xf] }
  0xa5   :  { %112 = vrot.lane.b32.xlu0 %v101_v28, %s2119_s5  ;;  %246 = vrot.lane.b32.xlu2 %v236_v15, %s2118_s4  ;;  %v648_v15 = vld [vmem:[#allocation2 + $0xc] sm:$0xf]  ;;  %v391_v28 = vsel %vm388_vm7, %v380_v38, %v390_v47  ;;  %v2513_v38 = vld [vmem:[#allocation2] sm:$0xff] }
  0xa6   :  { %v2006_v37 = vpack.i.bf16 %v650_v18, %v648_v15  ;;  %395 = vst [vmem:[#allocation3 + $0xf0] sm:$0xff] %v391_v28  ;;  %v150_v15 = vsel %vm149_vm4, %v137_v41, %v148_v7  ;;  %v522_v18 = vsel %vm2347_vm10, %v518_v22, 0  ;;  %v519_v43 = vsel %vm2382_vm15, %v2513_v38, 0 }
  0xa7   :  { %155 = vst [vmem:[#allocation3 + $0x20] sm:$0xff] %v150_v15  ;;  %v682_v41 = vsel %vm2435_vm3, %v678_v33, 0 }
  0xa8   :  { %v2023_v44 = vpack.i.bf16 %v682_v41, %v680_v40 }
  0xa9   :  { %190 = vrot.lane.b32.xlu1 %v182_v53, %s2115_s28  ;;  %v516_v53 = vld [vmem:[#allocation2 + $0x8] sm:$0xf] }
  0xad   :  { %194 = vrot.lane.b32.xlu0 %v184_v54, %s2115_s28  ;;  %110 = vrot.lane.b32.xlu2 %v100_v31, %s2119_s5  ;;  %v588_v31 = vsel %vm2366_vm2, %v584_v45, 0  ;;  %v1932_v29 = vld [vmem:[#allocation3 + $0xec] sm:$0xf0]  ;;  %v1854_v3 = vld [vmem:[#allocation3 + $0xf0] sm:$0xf0] }
  0xae   :  { %v2016_v54 = vpack.i.bf16 %v590_v52, %v588_v31  ;;  %v1853_v25 = vor.u32 %v1932_v29, %v1852_v0  ;;  %v1857_v8 = vor.u32 %v1930_v1, %v1854_v3 }
  0xb0   :  { %976 = vmatpush.bf16.msra.mxu0 %v1853_v25  ;;  %1014 = vmatpush.bf16.msra.mxu2 %v1857_v8 }
  0xb1   :  { %108 = vrot.lane.b32.xlu1 %v99_v55, %s2119_s5  ;;  %v520_v55 = vsel %vm2347_vm10, %v516_v53, 0  ;;  %vm3084_vm10 = vcmask 121856  }
  0xb2   :  { %vm3085_vm2 = vmmov %vm3084_vm10 }
  0xb3   :  { %vm3089_vm3 = vmmov %vm3085_vm2 }
  0xb5   :  { %2002 = vrot.lane.b32.xlu2 %v2001_v11, %s2116_s29  ;;  %106 = vrot.lane.b32.xlu0 %v98_v57, %s2119_s5  ;;  %v143_v57 = vpop.permute.xlu2 %142  ;;  %v621_v11 = vsel %vm2311_vm12, %v2186_v17, 0 }
  0xb6   :  { %v147_v32 = vrot.slane %v143_v57, 4 }
  0xb8   :  { %v151_v6 = vsel %vm118_vm1, %v146_v62, %v147_v32 }
  0xb9   :  { %426 = vrot.lane.b32.xlu1 %v418_v14, %s2116_s29  ;;  %v152_v14 = vsel %vm149_vm4, %v141_v60, %v151_v6  ;;  %v459_v6 = vsel %vm2330_vm6, %v2513_v38, 0  ;;  %vm3082_vm6 = vmmov %vm3079_vm14 }
  0xba   :  { %156 = vst [vmem:[#allocation3 + $0x30] sm:$0xff] %v152_v14 }
  0xbd   :  { %2007 = vrot.lane.b32.xlu2 %v2006_v37, %s2120_s6  ;;  %430 = vrot.lane.b32.xlu0 %v420_v19, %s2116_s29  ;;  %v589_v37 = vsel %vm2404_vm8, %v2186_v17, 0  ;;  %v551_v19 = vsel %vm2288_vm11, %v2513_v38, 0  ;;  %vm3080_vm11 = vcmask 1039360   ;;  %vm3087_vm8 = vcmask 908288  }
  0xbe   :  { %vm3081_vm12 = vmmov %vm3080_vm11 }
  0xbf   :  { %vm3088_vm0 = vmmov %vm3087_vm8 }
  0xc1   :  { %655 = vrot.lane.b32.xlu1 %v2183_v16, %s2120_s6 }
  0xc5   :  { %2012 = vrot.lane.b32.xlu2 %v2011_v36, %s2117_s30  ;;  %659 = vrot.lane.b32.xlu0 %v2186_v17, %s2120_s6 }
  0xc9   :  { %565 = vrot.lane.b32.xlu1 %v554_v50, %s2118_s4  ;;  %v679_v50 = vsel %vm2448_vm5, %v2183_v16, 0  ;;  %vm3090_vm5 = vmmov %vm3080_vm11 }
  0xcd   :  { %2017 = vrot.lane.b32.xlu2 %v2016_v54, %s2114_s0  ;;  %529 = vrot.lane.b32.xlu0 %v520_v55, %s2115_s28  ;;  %v456_v55 = vld [vmem:[#allocation2 + $0x8] sm:$0xf] }
  0xce   :  { %v460_v60 = vsel %vm2320_vm13, %v456_v55, 0 }
  0xd1   :  { %627 = vrot.lane.b32.xlu1 %v619_v49, %s2117_s30 }
  0xd5   :  { %561 = vrot.lane.b32.xlu2 %v552_v9, %s2118_s4  ;;  %631 = vrot.lane.b32.xlu0 %v621_v11, %s2117_s30 }
  0xd9   :  { %595 = vrot.lane.b32.xlu1 %v587_v56, %s2114_s0 }
  0xdd   :  { %533 = vrot.lane.b32.xlu2 %v522_v18, %s2115_s28  ;;  %599 = vrot.lane.b32.xlu0 %v589_v37, %s2114_s0 }
  0xe1   :  { %559 = vrot.lane.b32.xlu1 %v551_v19, %s2118_s4  ;;  %v458_v19 = vld [vmem:[#allocation2 + $0x18] sm:$0xf] }
  0xe5   :  { %527 = vrot.lane.b32.xlu2 %v519_v43, %s2115_s28  ;;  %563 = vrot.lane.b32.xlu0 %v553_v58, %s2118_s4  ;;  %v462_v58 = vsel %vm2320_vm13, %v458_v19, 0  ;;  %vm3083_vm13 = vcmask 138240   ;;  %v1908_v19 = vld [vmem:[#allocation3 + $0x2c] sm:$0xf0] }
  0xe6   :  { %vm3086_vm15 = vmmov %vm3083_vm13 }
  0xe7   :  { %v2526_v21 = vpop.permute.xlu2 %192 }
  0xe9   :  { %531 = vrot.lane.b32.xlu1 %v521_v24, %s2115_s28  ;;  %v1804_v24 = vld [vmem:[#allocation3 + $0x80] sm:$0xf] }
  0xed   :  { %495 = vrot.lane.b32.xlu2 %v2513_v38, %s2121_s7  ;;  %753 = vperm.xlu0 %2021, %v747_v5   ;;  %v1920_v5 = vld [vmem:[#allocation3 + $0x8c] sm:$0xf0] }
  0xee   :  { %v1805_v34 = vor.u32 %v1920_v5, %v1804_v24 }
  0xef   :  { %v352_v26 = vpop.permute.xlu2 %351 }
  0xf0   :  { %v357_v47 = vrot.slane %v352_v26, 4 }
  0xf1   :  { %758 = vperm.xlu1 %2022, %v748_v10  }
  0xf5   :  { %499 = vrot.lane.b32.xlu2 %v549_v20, %s2121_s7  ;;  %501 = vrot.lane.b32.xlu0 %v490_v27, %s2121_s7  ;;  %v1918_v27 = vld [vmem:[#allocation3 + $0x84] sm:$0xf] }
  0xf7   :  { %v249_v12 = vpop.permute.xlu0 %248  ;;  %v302_v36 = vpop.permute.xlu2 %301 }
  0xf8   :  { %v253_v31 = vrot.slane %v249_v12, 4  ;;  %v307_v62 = vrot.slane %v302_v36, 4 }
  0xf9   :  { %497 = vrot.lane.b32.xlu1 %v488_v35, %s2121_s7 }
  0xfb   :  { %v1993_v42 = vpop.permute.xlu1 %1992 }
  0xfc   :  { %v1995_v2 = vunpack.i.h.bf16 %v1993_v42  ;;  %v1994_v45 = vunpack.i.l.bf16 %v1993_v42 }
  0xfd   :  { %2024 = vrot.lane.b32.xlu2 %v2023_v44, %s2116_s29  ;;  %691 = vrot.lane.b32.xlu0 %v681_v46, %s2116_s29  ;;  %v1809_v44 = vor.u32 %v1918_v27, %v1806_v51 }
  0xfe   :  { %v358_v48 = vrot.slane %v1995_v2, 4  ;;  %v356_v28 = vrot.slane %v1994_v45, 4 }
  0xff   :  { %v348_v30 = vpop.permute.xlu0 %347  ;;  %v247_v4 = vpop.permute.xlu2 %246 }
 0x100   :  { %v361_v52 = vsel %vm118_vm1, %v357_v47, %v358_v48  ;;  %v355_v53 = vrot.slane %v348_v30, 4  ;;  %v252_v54 = vrot.slane %v247_v4, 4 }
 0x101   :  { %v362_v17 = vsel %vm166_vm9, %v352_v26, %v361_v52  ;;  %687 = vrot.lane.b32.xlu1 %v679_v50, %s2116_s29 }
 0x102   :  { %366 = vst [vmem:[#allocation3 + $0xd0] sm:$0xff] %v362_v17  ;;  %v359_v57 = vsel %vm118_vm1, %v355_v53, %v356_v28  ;;  %v257_v23 = vsel %vm118_vm1, %v252_v54, %v253_v31  ;;  %v199_v53 = vrot.slane %v2526_v21, 4 }
 0x103   :  { %v360_v32 = vsel %vm166_vm9, %v348_v30, %v359_v57  ;;  %v258_v13 = vsel %vm3079_vm14, %v247_v4, %v257_v23  ;;  %v1998_v16 = vpop.permute.xlu1 %1997  ;;  %vm3093_vm14 = vmmov %vm3082_vm6 }
 0x104   :  { %365 = vst [vmem:[#allocation3 + $0xc0] sm:$0xff] %v360_v32  ;;  %v2000_v49 = vunpack.i.h.bf16 %v1998_v16  ;;  %v1999_v59 = vunpack.i.l.bf16 %v1998_v16 }
 0x105   :  { %262 = vst [vmem:[#allocation3 + $0x70] sm:$0xff] %v258_v13  ;;  %469 = vrot.lane.b32.xlu2 %v460_v60, %s2119_s5  ;;  %471 = vrot.lane.b32.xlu0 %v461_v61, %s2119_s5 }
 0x106   :  { %v308_v63 = vrot.slane %v2000_v49, 4  ;;  %v306_v0 = vrot.slane %v1999_v59, 4 }
 0x107   :  { %v298_v29 = vpop.permute.xlu0 %297  ;;  %v111_v25 = vpop.permute.xlu2 %110 }
 0x108   :  { %v311_v1 = vsel %vm118_vm1, %v307_v62, %v308_v63  ;;  %v305_v3 = vrot.slane %v298_v29, 4  ;;  %v116_v46 = vrot.slane %v111_v25, 4 }
 0x109   :  { %v312_v7 = vsel %vm3080_vm11, %v302_v36, %v311_v1  ;;  %467 = vrot.lane.b32.xlu1 %v459_v6, %s2119_s5  ;;  %v1928_v9 = vld [vmem:[#allocation3 + $0xcc] sm:$0xf0]  ;;  %v1838_v22 = vld [vmem:[#allocation3 + $0xd0] sm:$0xf0]  ;;  %vm3094_vm11 = vmmov %vm3085_vm2 }
 0x10a   :  { %316 = vst [vmem:[#allocation3 + $0xb0] sm:$0xff] %v312_v7  ;;  %v309_v8 = vsel %vm118_vm1, %v305_v3, %v306_v0 }
 0x10b   :  { %v310_v11 = vsel %vm3081_vm12, %v298_v29, %v309_v8  ;;  %v245_v14 = vpop.permute.xlu1 %244  ;;  %v1836_v15 = vld [vmem:[#allocation3 + $0xc0] sm:$0xf]  ;;  %v1926_v56 = vld [vmem:[#allocation3 + $0xc4] sm:$0xf]  ;;  %vm3095_vm12 = vmmov %vm3088_vm0 }
 0x10c   :  { %315 = vst [vmem:[#allocation3 + $0xa0] sm:$0xff] %v310_v11  ;;  %v1837_v18 = vor.u32 %v1928_v9, %v1836_v15  ;;  %v1841_v37 = vor.u32 %v1926_v56, %v1838_v22  ;;  %v251_v20 = vrot.slane %v245_v14, 4  ;;  %v1916_v28 = vld [vmem:[#allocation3 + $0x6c] sm:$0xf0]  ;;  %v1790_v52 = vld [vmem:[#allocation3 + $0x70] sm:$0xf0] }
 0x10e   :  { %977 = vmatpush.bf16.msra.mxu0 %v1837_v18  ;;  %1015 = vmatpush.bf16.msra.mxu2 %v1841_v37  ;;  %v1756_v18 = vld [vmem:[#allocation3 + $0x20] sm:$0xf] }
 0x10f   :  { %v243_v39 = vpop.permute.xlu0 %242  ;;  %v2575_v38 = vpop.permute.xlu2 %2002 }
 0x110   :  { %v250_v43 = vrot.slane %v243_v39, 4  ;;  %v2004_v63 = vunpack.i.l.bf16 %v2575_v38  ;;  %v2005_v3 = vunpack.i.h.bf16 %v2575_v38 }
 0x111   :  { %473 = vrot.lane.b32.xlu1 %v462_v58, %s2119_s5  ;;  %v1924_v26 = vld [vmem:[#allocation3 + $0xac] sm:$0xf0]  ;;  %v1822_v40 = vld [vmem:[#allocation3 + $0xb0] sm:$0xf0] }
 0x112   :  { %v254_v10 = vsel %vm118_vm1, %v250_v43, %v251_v20  ;;  %v435_v14 = vrot.slane %v2004_v63, 4  ;;  %v1758_v20 = vld [vmem:[#allocation3 + $0x30] sm:$0xf0]  ;;  %v437_v5 = vrot.slane %v2005_v3, 4 }
 0x113   :  { %v256_v33 = vsel %vm3082_vm6, %v243_v39, %v254_v10  ;;  %v197_v35 = vpop.permute.xlu1 %196  ;;  %v1820_v12 = vld [vmem:[#allocation3 + $0xa0] sm:$0xf]  ;;  %v1922_v36 = vld [vmem:[#allocation3 + $0xa4] sm:$0xf] }
 0x114   :  { %261 = vst [vmem:[#allocation3 + $0x60] sm:$0xff] %v256_v33  ;;  %v1821_v41 = vor.u32 %v1924_v26, %v1820_v12  ;;  %v1825_v42 = vor.u32 %v1922_v36, %v1822_v40  ;;  %v201_v16 = vrot.slane %v197_v35, 4  ;;  %v1906_v39 = vld [vmem:[#allocation3 + $0x24] sm:$0xf]  ;;  %v1757_v26 = vor.u32 %v1908_v19, %v1756_v18  ;;  %v1724_v36 = vld [vmem:[%s3026_s1] sm:$0xf] }
 0x115   :  { %v1761_v27 = vor.u32 %v1906_v39, %v1758_v20  ;;  %v1899_v40 = vld [vmem:[%s3026_s1 + $0x4] sm:$0xf0] }
 0x116   :  { %978 = vmatpush.bf16.msra.mxu0 %v1821_v41  ;;  %1016 = vmatpush.bf16.msra.mxu2 %v1825_v42 }
 0x117   :  { %v113_v2 = vpop.permute.xlu0 %112  ;;  %v2582_v45 = vpop.permute.xlu2 %2007 }
 0x118   :  { %v117_v47 = vrot.slane %v113_v2, 4  ;;  %v2009_v37 = vunpack.i.l.bf16 %v2582_v45  ;;  %v2010_v33 = vunpack.i.h.bf16 %v2582_v45 }
 0x11a   :  { %v122_v48 = vsel %vm118_vm1, %v116_v46, %v117_v47  ;;  %979 = vmatpush.bf16.msra.mxu0 %v1805_v34  ;;  %1017 = vmatpush.bf16.msra.mxu2 %v1809_v44  ;;  %v664_v51 = vrot.slane %v2009_v37, 4 }
 0x11b   :  { %v123_v30 = vsel %vm3083_vm13, %v111_v25, %v122_v48  ;;  %v191_v4 = vpop.permute.xlu1 %190  ;;  %v1788_v50 = vld [vmem:[#allocation3 + $0x60] sm:$0xf]  ;;  %v1914_v31 = vld [vmem:[#allocation3 + $0x64] sm:$0xf]  ;;  %v2613_v48 = vor.u32 %v1899_v40, %v1724_v36 }
 0x11c   :  { %127 = vst [vmem:[#allocation3 + $0x10] sm:$0xff] %v123_v30  ;;  %v198_v54 = vrot.slane %v191_v4, 4  ;;  %v1789_v17 = vor.u32 %v1916_v28, %v1788_v50  ;;  %v1793_v55 = vor.u32 %v1914_v31, %v1790_v52  ;;  %v666_v28 = vrot.slane %v2010_v33, 4 }
 0x11e   :  { %v202_v57 = vsel %vm118_vm1, %v198_v54, %v199_v53  ;;  %980 = vmatpush.bf16.msra.mxu0 %v1789_v17  ;;  %1018 = vmatpush.bf16.msra.mxu2 %v1793_v55  ;;  %v1898_v17 = vld [vmem:[%s3026_s1 + $0x4] sm:$0xf]  ;;  %v1726_v55 = vld [vmem:[%s3026_s1 + $0x8] sm:$0xf0] }
 0x11f   :  { %v204_v23 = vsel %vm3084_vm10, %v191_v4, %v202_v57  ;;  %v195_v32 = vpop.permute.xlu0 %194  ;;  %v2589_v13 = vpop.permute.xlu2 %2012  ;;  %vm3097_vm10 = vmmov %vm3083_vm13 }
 0x120   :  { %209 = vst [vmem:[#allocation3 + $0x40] sm:$0xff] %v204_v23  ;;  %v200_v49 = vrot.slane %v195_v32, 4 }
 0x122   :  { %v205_v59 = vsel %vm118_vm1, %v200_v49, %v201_v16 }
 0x123   :  { %v206_v21 = vsel %vm3085_vm2, %v195_v32, %v205_v59  ;;  %v109_v60 = vpop.permute.xlu1 %108  ;;  %v1904_v12 = vld [vmem:[#allocation3 + $0xc] sm:$0xf0]  ;;  %v1742_v2 = vld [vmem:[#allocation3 + $0x10] sm:$0xf0] }
 0x124   :  { %210 = vst [vmem:[#allocation3 + $0x50] sm:$0xff] %v206_v21  ;;  %v115_v0 = vrot.slane %v109_v60, 4  ;;  %v2631_v60 = vor.u32 %v1898_v17, %v1726_v55  ;;  %v1921_v17 = vld [vmem:[#allocation3 + $0x94] sm:$0xf0] }
 0x127   :  { %v2593_v61 = vpop.permute.xlu2 %2017  ;;  %v107_v62 = vpop.permute.xlu0 %106  ;;  %v1772_v1 = vld [vmem:[#allocation3 + $0x40] sm:$0xf]  ;;  %v1910_v9 = vld [vmem:[#allocation3 + $0x44] sm:$0xf] }
 0x128   :  { %v114_v29 = vrot.slane %v107_v62, 4  ;;  %v2019_v20 = vunpack.i.l.bf16 %v2593_v61 }
 0x12a   :  { %v119_v25 = vsel %vm118_vm1, %v114_v29, %v115_v0  ;;  %v2014_v0 = vunpack.i.l.bf16 %v2589_v13 }
 0x12b   :  { %v121_v6 = vsel %vm3086_vm15, %v107_v62, %v119_v25  ;;  %v427_v7 = vpop.permute.xlu1 %426  ;;  %v1912_v8 = vld [vmem:[#allocation3 + $0x4c] sm:$0xf0]  ;;  %v1774_v11 = vld [vmem:[#allocation3 + $0x50] sm:$0xf0] }
 0x12c   :  { %126 = vst [vmem:[#allocation3] sm:$0xff] %v121_v6  ;;  %v434_v15 = vrot.slane %v427_v7, 4  ;;  %v1773_v56 = vor.u32 %v1912_v8, %v1772_v1  ;;  %v1777_v22 = vor.u32 %v1910_v9, %v1774_v11 }
 0x12e   :  { %v438_v43 = vsel %vm118_vm1, %v434_v15, %v435_v14  ;;  %981 = vmatpush.bf16.msra.mxu0 %v1773_v56  ;;  %1019 = vmatpush.bf16.msra.mxu2 %v1777_v22  ;;  %v636_v15 = vrot.slane %v2014_v0, 4 }
 0x12f   :  { %v439_v38 = vsel %vm3087_vm8, %v427_v7, %v438_v43  ;;  %v2602_v58 = vpop.permute.xlu2 %561  ;;  %v431_v24 = vpop.permute.xlu0 %430  ;;  %v2015_v7 = vunpack.i.h.bf16 %v2589_v13 }
 0x130   :  { %444 = vst [vmem:[#allocation3 + $0x100] sm:$0xff] %v439_v38  ;;  %v436_v10 = vrot.slane %v431_v24, 4 }
 0x131   :  { %v638_v13 = vrot.slane %v2015_v7, 4 }
 0x132   :  { %v440_v35 = vsel %vm118_vm1, %v436_v10, %v437_v5  ;;  %982 = vmatpush.bf16.msra.mxu0 %v1757_v26  ;;  %1020 = vmatpush.bf16.msra.mxu2 %v1761_v27  ;;  %v2020_v10 = vunpack.i.h.bf16 %v2593_v61  ;;  %v604_v26 = vrot.slane %v2019_v20, 4 }
 0x133   :  { %v441_v41 = vsel %vm3088_vm0, %v431_v24, %v440_v35  ;;  %v656_v42 = vpop.permute.xlu1 %655  ;;  %v1740_v34 = vld [vmem:[#allocation3] sm:$0xf]  ;;  %v1902_v44 = vld [vmem:[#allocation3 + $0x4] sm:$0xf] }
 0x134   :  { %445 = vst [vmem:[#allocation3 + $0x110] sm:$0xff] %v441_v41  ;;  %v663_v45 = vrot.slane %v656_v42, 4  ;;  %v1741_v46 = vor.u32 %v1904_v12, %v1740_v34  ;;  %v1745_v47 = vor.u32 %v1902_v44, %v1742_v2  ;;  %v606_v12 = vrot.slane %v2020_v10, 4 }
 0x136   :  { %v667_v30 = vsel %vm118_vm1, %v663_v45, %v664_v51  ;;  %983 = vmatpush.bf16.msra.mxu0 %v1741_v46  ;;  %1021 = vmatpush.bf16.msra.mxu2 %v1745_v47  ;;  %v568_v45 = vrot.slane %v2602_v58, 4  ;;  %v1812_v58 = vld [vmem:[#allocation3 + $0x88] sm:$0xf] }
 0x137   :  { %v668_v4 = vsel %vm388_vm7, %v656_v42, %v667_v30  ;;  %v2617_v50 = vpop.permute.xlu2 %533  ;;  %v660_v31 = vpop.permute.xlu0 %659  ;;  %v1868_v54 = vld [vmem:[#allocation3 + $0x100] sm:$0xf]  ;;  %v1934_v16 = vld [vmem:[#allocation3 + $0x104] sm:$0xf] }
 0x138   :  { %673 = vst [vmem:[#allocation3 + $0xe8] sm:$0xff] %v668_v4  ;;  %v665_v52 = vrot.slane %v660_v31, 4  ;;  %v538_v0 = vrot.slane %v2617_v50, 4  ;;  %v1732_v50 = vld [vmem:[%s3026_s1 + $0x10] sm:$0xf] }
 0x139   :  { %1022 = vmatmul.bf16.vlgmr.msra.gmra.mxu2 %v2613_v48  ;;  %984 = vmatmul.bf16.vlgmr.msra.gmra.mxu0 %v2613_v48 }
 0x13a   :  { %v669_v53 = vsel %vm118_vm1, %v665_v52, %v666_v28 }
 0x13b   :  { %v670_v57 = vsel %vm388_vm7, %v660_v31, %v669_v53  ;;  %v2629_v23 = vpop.permute.xlu1 %565  ;;  %v1936_v32 = vld [vmem:[#allocation3 + $0x10c] sm:$0xf0]  ;;  %v1870_v49 = vld [vmem:[#allocation3 + $0x110] sm:$0xf0]  ;;  %vm3091_vm7 = vmmov %vm3090_vm5 }
 0x13c   :  { %674 = vst [vmem:[#allocation3 + $0xf8] sm:$0xff] %v670_v57  ;;  %v1869_v59 = vor.u32 %v1936_v32, %v1868_v54  ;;  %v1873_v21 = vor.u32 %v1934_v16, %v1870_v49  ;;  %v570_v53 = vrot.slane %v2629_v23, 4  ;;  %v1919_v32 = vld [vmem:[#allocation3 + $0x8c] sm:$0xf]  ;;  %v1814_v16 = vld [vmem:[#allocation3 + $0x98] sm:$0xf0] }
 0x13e   :  { %1002 = vmatpush.bf16.msra.mxu1 %v1869_v59  ;;  %1040 = vmatpush.bf16.msra.mxu3 %v1873_v21 }
 0x13f   :  { %v528_v62 = vpop.permute.xlu2 %527  ;;  %v530_v63 = vpop.permute.xlu0 %529  ;;  %v1860_v1 = vld [vmem:[#allocation3 + $0xe8] sm:$0xf]  ;;  %v1931_v3 = vld [vmem:[#allocation3 + $0xec] sm:$0xf] }
 0x140   :  { %v535_v29 = vrot.slane %v528_v62, 4  ;;  %v536_v25 = vrot.slane %v530_v63, 4 }
 0x141   :  { %1882 = vmatmul.msk.bf16.vlgmr.msra.gmra.mxu1 %vm149_vm4, %v2631_v60  ;;  %1884 = vmatmul.msk.bf16.vlgmr.msra.gmra.mxu3 %vm149_vm4, %v2631_v60 }
 0x142   :  { %v539_v6 = vsel %vm118_vm1, %v535_v29, %v536_v25 }
 0x143   :  { %v540_v8 = vsel %vm3089_vm3, %v528_v62, %v539_v6  ;;  %v628_v9 = vpop.permute.xlu1 %627  ;;  %v1933_v11 = vld [vmem:[#allocation3 + $0xf4] sm:$0xf0]  ;;  %v1862_v14 = vld [vmem:[#allocation3 + $0xf8] sm:$0xf0]  ;;  %v2670_v6 = vor.u32 %v1919_v32, %v1814_v16 }
 0x144   :  { %545 = vst [vmem:[#allocation3 + $0x48] sm:$0xff] %v540_v8  ;;  %v635_v56 = vrot.slane %v628_v9, 4  ;;  %v1861_v22 = vor.u32 %v1933_v11, %v1860_v1  ;;  %v2641_v18 = vor.u32 %v1931_v3, %v1862_v14  ;;  %v1813_v3 = vor.u32 %v1921_v17, %v1812_v58  ;;  %v1901_v11 = vld [vmem:[%s3026_s1 + $0x14] sm:$0xf0] }
 0x145   :  { %v2681_v14 = vor.u32 %v1901_v11, %v1732_v50 }
 0x146   :  { %v639_v37 = vsel %vm118_vm1, %v635_v56, %v636_v15  ;;  %1052 = vmatpush.bf16.msrb.mxu1 %v1861_v22  ;;  %1090 = vmatpush.bf16.msrb.mxu0 %v2641_v18  ;;  %v1900_v15 = vld [vmem:[%s3026_s1 + $0x14] sm:$0xf]  ;;  %v1734_v56 = vld [vmem:[%s3026_s1 + $0x18] sm:$0xf0] }
 0x147   :  { %v640_v19 = vsel %vm166_vm9, %v628_v9, %v639_v37  ;;  %v632_v39 = vpop.permute.xlu0 %631  ;;  %v2657_v30 = vpop.permute.xlu2 %495  ;;  %v2690_v37 = vor.u32 %v1900_v15, %v1734_v56 }
 0x148   :  { %645 = vst [vmem:[#allocation3 + $0xc8] sm:$0xff] %v640_v19  ;;  %v637_v43 = vrot.slane %v632_v39, 4 }
 0x149   :  { %1027 = vmatmul.bf16.gmra.mxu2 %v2681_v14  ;;  %989 = vmatmul.bf16.gmra.mxu0 %v2681_v14 }
 0x14a   :  { %v641_v38 = vsel %vm118_vm1, %v637_v43, %v638_v13 }
 0x14b   :  { %v642_v24 = vsel %vm166_vm9, %v632_v39, %v641_v38  ;;  %v596_v5 = vpop.permute.xlu1 %595  ;;  %vm3092_vm9 = vmmov %vm3082_vm6 }
 0x14c   :  { %646 = vst [vmem:[#allocation3 + $0xd8] sm:$0xff] %v642_v24  ;;  %v603_v27 = vrot.slane %v596_v5, 4  ;;  %vm3096_vm6 = vmmov %vm3088_vm0 }
 0x14e   :  { %v607_v51 = vsel %vm118_vm1, %v603_v27, %v604_v26  ;;  %v1911_v27 = vld [vmem:[#allocation3 + $0x4c] sm:$0xf] }
 0x14f   :  { %v608_v33 = vsel %vm3090_vm5, %v596_v5, %v607_v51  ;;  %v600_v35 = vpop.permute.xlu0 %599  ;;  %v1844_v41 = vld [vmem:[#allocation3 + $0xc8] sm:$0xf]  ;;  %v1927_v2 = vld [vmem:[#allocation3 + $0xcc] sm:$0xf]  ;;  %v500_v7 = vpop.permute.xlu2 %499 }
 0x150   :  { %613 = vst [vmem:[#allocation3 + $0xa8] sm:$0xff] %v608_v33  ;;  %v605_v36 = vrot.slane %v600_v35, 4  ;;  %v505_v24 = vrot.slane %v500_v7, 4  ;;  %v1780_v5 = vld [vmem:[#allocation3 + $0x48] sm:$0xf] }
 0x151   :  { %1885 = vmatmul.msk.bf16.gmra.mxu3 %vm149_vm4, %v2690_v37  ;;  %1883 = vmatmul.msk.bf16.gmra.mxu1 %vm149_vm4, %v2690_v37 }
 0x152   :  { %v609_v40 = vsel %vm118_vm1, %v605_v36, %v606_v12 }
 0x153   :  { %v610_v42 = vsel %vm3091_vm7, %v600_v35, %v609_v40  ;;  %v560_v34 = vpop.permute.xlu1 %559  ;;  %v1929_v44 = vld [vmem:[#allocation3 + $0xd4] sm:$0xf0]  ;;  %v1846_v61 = vld [vmem:[#allocation3 + $0xd8] sm:$0xf0]  ;;  %v503_v40 = vrot.slane %v2657_v30, 4 }
 0x154   :  { %614 = vst [vmem:[#allocation3 + $0xb8] sm:$0xff] %v610_v42  ;;  %v567_v46 = vrot.slane %v560_v34, 4  ;;  %v1845_v47 = vor.u32 %v1929_v44, %v1844_v41  ;;  %v2655_v28 = vor.u32 %v1927_v2, %v1846_v61 }
 0x156   :  { %v571_v4 = vsel %vm118_vm1, %v567_v46, %v568_v45  ;;  %1053 = vmatpush.bf16.msrb.mxu1 %v1845_v47  ;;  %1091 = vmatpush.bf16.msrb.mxu0 %v2655_v28 }
 0x157   :  { %v572_v31 = vsel %vm3092_vm9, %v560_v34, %v571_v4  ;;  %v564_v52 = vpop.permute.xlu0 %563  ;;  %v1828_v57 = vld [vmem:[#allocation3 + $0xa8] sm:$0xf]  ;;  %v1923_v62 = vld [vmem:[#allocation3 + $0xac] sm:$0xf]  ;;  %v2025_v36 = vpop.permute.xlu2 %2024 }
 0x158   :  { %577 = vst [vmem:[#allocation3 + $0x68] sm:$0xff] %v572_v31  ;;  %v569_v54 = vrot.slane %v564_v52, 4  ;;  %v2027_v44 = vunpack.i.h.bf16 %v2025_v36  ;;  %v2026_v4 = vunpack.i.l.bf16 %v2025_v36 }
 0x15a   :  { %v573_v55 = vsel %vm118_vm1, %v569_v54, %v570_v53  ;;  %v698_v47 = vrot.slane %v2027_v44, 4  ;;  %v696_v58 = vrot.slane %v2026_v4, 4 }
 0x15b   :  { %v574_v49 = vsel %vm3093_vm14, %v564_v52, %v573_v55  ;;  %v532_v59 = vpop.permute.xlu1 %531  ;;  %v1925_v21 = vld [vmem:[#allocation3 + $0xb4] sm:$0xf0]  ;;  %v1830_v63 = vld [vmem:[#allocation3 + $0xb8] sm:$0xf0] }
 0x15c   :  { %578 = vst [vmem:[#allocation3 + $0x78] sm:$0xff] %v574_v49  ;;  %v537_v29 = vrot.slane %v532_v59, 4  ;;  %v1829_v23 = vor.u32 %v1925_v21, %v1828_v57  ;;  %v2666_v25 = vor.u32 %v1923_v62, %v1830_v63 }
 0x15e   :  { %v541_v1 = vsel %vm118_vm1, %v537_v29, %v538_v0  ;;  %1054 = vmatpush.bf16.msrb.mxu1 %v1829_v23  ;;  %1092 = vmatpush.bf16.msrb.mxu0 %v2666_v25 }
 0x15f   :  { %v542_v8 = vsel %vm3094_vm11, %v532_v59, %v541_v1  ;;  %v2673_v9 = vpop.permute.xlu0 %753  ;;  %v1796_v22 = vld [vmem:[#allocation3 + $0x68] sm:$0xf]  ;;  %v1915_v13 = vld [vmem:[#allocation3 + $0x6c] sm:$0xf]  ;;  %v470_v62 = vpop.permute.xlu2 %469 }
 0x160   :  { %546 = vst [vmem:[#allocation3 + $0x58] sm:$0xff] %v542_v8  ;;  %v476_v0 = vrot.slane %v470_v62, 4 }
 0x162   :  { %1055 = vmatpush.bf16.msrb.mxu1 %v1813_v3  ;;  %1093 = vmatpush.bf16.msrb.mxu0 %v2670_v6 }
 0x163   :  { %v2692_v19 = vpop.permute.xlu1 %758  ;;  %v1917_v39 = vld [vmem:[#allocation3 + $0x74] sm:$0xf0]  ;;  %v1798_v20 = vld [vmem:[#allocation3 + $0x78] sm:$0xf0] }
 0x164   :  { %v1797_v43 = vor.u32 %v1917_v39, %v1796_v22  ;;  %v2696_v38 = vor.u32 %v1915_v13, %v1798_v20 }
 0x166   :  { %1056 = vmatpush.bf16.msrb.mxu1 %v1797_v43  ;;  %1094 = vmatpush.bf16.msrb.mxu0 %v2696_v38 }
 0x167   :  { %v502_v10 = vpop.permute.xlu0 %501  ;;  %v1913_v26 = vld [vmem:[#allocation3 + $0x54] sm:$0xf0]  ;;  %v1782_v51 = vld [vmem:[#allocation3 + $0x58] sm:$0xf0] }
 0x168   :  { %v506_v33 = vrot.slane %v502_v10, 4  ;;  %v1781_v35 = vor.u32 %v1913_v26, %v1780_v5  ;;  %v2703_v12 = vor.u32 %v1911_v27, %v1782_v51 }
 0x16a   :  { %v509_v41 = vsel %vm118_vm1, %v505_v24, %v506_v33  ;;  %1057 = vmatpush.bf16.msrb.mxu1 %v1781_v35  ;;  %1095 = vmatpush.bf16.msrb.mxu0 %v2703_v12 }
 0x16b   :  { %v510_v42 = vsel %vm149_vm4, %v500_v7, %v509_v41  ;;  %v498_v34 = vpop.permute.xlu1 %497 }
 0x16c   :  { %514 = vst [vmem:[#allocation3 + $0x38] sm:$0xff] %v510_v42  ;;  %v504_v2 = vrot.slane %v498_v34, 4 }
 0x16e   :  { %v507_v61 = vsel %vm118_vm1, %v503_v40, %v504_v2 }
 0x16f   :  { %v508_v45 = vsel %vm149_vm4, %v2657_v30, %v507_v61  ;;  %v692_v46 = vpop.permute.xlu0 %691 }
 0x170   :  { %513 = vst [vmem:[#allocation3 + $0x28] sm:$0xff] %v508_v45  ;;  %v697_v31 = vrot.slane %v692_v46, 4 }
 0x172   :  { %v701_v52 = vsel %vm118_vm1, %v697_v31, %v698_v47  ;;  %v2765_v31 = vld [vmem:[%s3025_s2 + $0x18] sm:$0xff] }
 0x173   :  { %v702_v53 = vsel %vm3095_vm12, %v692_v46, %v701_v52  ;;  %v688_v54 = vpop.permute.xlu1 %687  ;;  %v1909_v55 = vld [vmem:[#allocation3 + $0x34] sm:$0xf0]  ;;  %v1766_v57 = vld [vmem:[#allocation3 + $0x38] sm:$0xf0]  ;;  %v2771_v52 = vld [vmem:[%s3025_s2 + $0x10] sm:$0xff] }
 0x174   :  { %706 = vst [vmem:[#allocation3 + $0x118] sm:$0xff] %v702_v53  ;;  %v695_v17 = vrot.slane %v688_v54, 4 }
 0x176   :  { %v699_v32 = vsel %vm118_vm1, %v695_v17, %v696_v58 }
 0x177   :  { %v700_v16 = vsel %vm3096_vm6, %v688_v54, %v699_v32  ;;  %v1764_v30 = vld [vmem:[#allocation3 + $0x28] sm:$0xf]  ;;  %v1907_v49 = vld [vmem:[#allocation3 + $0x2c] sm:$0xf]  ;;  %v472_v56 = vpop.permute.xlu0 %471 }
 0x178   :  { %705 = vst [vmem:[#allocation3 + $0x108] sm:$0xff] %v700_v16  ;;  %v1765_v59 = vor.u32 %v1909_v55, %v1764_v30  ;;  %v1769_v21 = vor.u32 %v1907_v49, %v1766_v57  ;;  %v477_v39 = vrot.slane %v472_v56, 4 }
 0x17a   :  { %1058 = vmatpush.bf16.msrb.mxu1 %v1765_v59  ;;  %1096 = vmatpush.bf16.msrb.mxu0 %v1769_v21 }
 0x17b   :  { %v468_v63 = vpop.permute.xlu1 %467  ;;  %v1937_v1 = vld [vmem:[#allocation3 + $0x114] sm:$0xf0]  ;;  %v1878_v50 = vld [vmem:[#allocation3 + $0x118] sm:$0xf0] }
 0x17c   :  { %v475_v29 = vrot.slane %v468_v63, 4 }
 0x17e   :  { %v479_v23 = vsel %vm118_vm1, %v475_v29, %v476_v0 }
 0x17f   :  { %v480_v3 = vsel %vm3083_vm13, %v468_v63, %v479_v23  ;;  %v1876_v7 = vld [vmem:[#allocation3 + $0x108] sm:$0xf]  ;;  %v1935_v8 = vld [vmem:[#allocation3 + $0x10c] sm:$0xf] }
 0x180   :  { %485 = vst [vmem:[#allocation3 + $0x8] sm:$0xff] %v480_v3  ;;  %v1877_v11 = vor.u32 %v1937_v1, %v1876_v7  ;;  %v1881_v15 = vor.u32 %v1935_v8, %v1878_v50 }
 0x182   :  { %1078 = vmatpush.bf16.msrb.mxu3 %v1877_v11  ;;  %1116 = vmatpush.bf16.msrb.mxu2 %v1881_v15 }
 0x183   :  { %v474_v22 = vpop.permute.xlu1 %473 }
 0x184   :  { %v478_v13 = vrot.slane %v474_v22, 4 }
 0x185   :  { %1886 = vmatmul.msk.bf16.vlgmr.msrb.gmra.mxu3 %vm149_vm4, %v2631_v60  ;;  %1888 = vmatmul.msk.bf16.vlgmr.msrb.gmra.mxu2 %vm149_vm4, %v2631_v60 }
 0x186   :  { %1946 = vmatpush.bf16.msra.mxu3 %v1881_v15  ;;  %v481_v20 = vsel %vm118_vm1, %v477_v39, %v478_v13  ;;  %vm3098_vm1 = vmmov %vm3092_vm9 }
 0x187   :  { %v482_v43 = vsel %vm3097_vm10, %v472_v56, %v481_v20  ;;  %v1748_v24 = vld [vmem:[#allocation3 + $0x8] sm:$0xf]  ;;  %v1903_v10 = vld [vmem:[#allocation3 + $0xc] sm:$0xf]  ;;  %vm3100_vm2 = vmmov %vm3098_vm1 }
 0x188   :  { %486 = vst [vmem:[#allocation3 + $0x18] sm:$0xff] %v482_v43  ;;  %vm3101_vm15 = vmmov %vm3098_vm1 }
 0x189   :  { %vm3102_vm0 = vmmov %vm3098_vm1 }
 0x18a   :  { %vm3103_vm3 = vmmov %vm3102_vm0 }
 0x18b   :  { %vm3104_vm5 = vmmov %vm3102_vm0 }
 0x18c   :  { %vm3105_vm7 = vmmov %vm3102_vm0 }
 0x18d   :  { %vm3106_vm12 = vmmov %vm3102_vm0 }
 0x18e   :  { %vm3107_vm6 = vmmov %vm3102_vm0 }
 0x18f   :  { %v1905_v5 = vld [vmem:[#allocation3 + $0x14] sm:$0xf0]  ;;  %v1750_v26 = vld [vmem:[#allocation3 + $0x18] sm:$0xf0]  ;;  %vm3108_vm13 = vmmov %vm3102_vm0 }
 0x190   :  { %v1749_v27 = vor.u32 %v1905_v5, %v1748_v24  ;;  %v1753_v51 = vor.u32 %v1903_v10, %v1750_v26  ;;  %vm3109_vm10 = vmmov %vm3102_vm0 }
 0x192   :  { %1059 = vmatpush.bf16.msrb.mxu1 %v1749_v27  ;;  %1097 = vmatpush.bf16.msrb.mxu0 %v1753_v51 }
 0x195   :  { %1060 = vmatmul.bf16.vlgmr.msrb.gmra.mxu1 %v2613_v48  ;;  %1098 = vmatmul.bf16.vlgmr.msrb.gmra.mxu0 %v2613_v48 }
 0x196   :  { %1938 = vmatpush.bf16.msra.mxu1 %v2641_v18  ;;  %1887 = vmatmul.msk.bf16.gmra.mxu3 %vm149_vm4, %v2690_v37 }
 0x19a   :  { %1939 = vmatpush.bf16.msra.mxu1 %v2655_v28 }
 0x19e   :  { %1940 = vmatpush.bf16.msra.mxu1 %v2666_v25 }
 0x1a2   :  { %1941 = vmatpush.bf16.msra.mxu1 %v2670_v6 }
 0x1a5   :  { %1065 = vmatmul.bf16.gmra.mxu1 %v2681_v14 }
 0x1a6   :  { %1942 = vmatpush.bf16.msra.mxu1 %v2696_v38  ;;  %1889 = vmatmul.msk.bf16.vlgmr.msra.gmra.mxu3 %vm149_vm4, %v2690_v37  ;;  %vm3099_vm4 = vmmov %vm3098_vm1 }
 0x1aa   :  { %1943 = vmatpush.bf16.msra.mxu1 %v2703_v12 }
 0x1ae   :  { %1944 = vmatpush.bf16.msra.mxu1 %v1769_v21 }
 0x1b2   :  { %1945 = vmatpush.bf16.msra.mxu1 %v1753_v51 }
 0x1b5   :  { %1103 = vmatmul.bf16.vlgmr.msra.gmra.mxu1 %v2681_v14 }
 0x1b6   :  { %v985_v48 = vpop.f32.mrf.mxu0 }
 0x1b7   :  { %v986_v60 = vadd.f32 %v985_v48, %v2673_v9 }
 0x1bc   :  { %v1023_v18 = vpop.f32.mrf.mxu2 }
 0x1bd   :  { %v1024_v25 = vadd.f32 %v1023_v18, %v2673_v9 }
 0x1be   :  { %v1004_v28 = vpop.f32.mrf.mxu1  ;;  %v987_v35 = vpop.f32.mrf.mxu0 }
 0x1bf   :  { %v2740_v6 = vadd.f32 %v1004_v28, %v986_v60  ;;  %v988_v41 = vadd.f32 %v987_v35, %v2692_v19 }
 0x1c1   :  { %v1140_v37 = vmul.f32 %v2740_v6, %v2740_v6 }
 0x1c4   :  { %v1042_v38 = vpop.f32.mrf.mxu3  ;;  %v1025_v36 = vpop.f32.mrf.mxu2 }
 0x1c5   :  { %v2742_v33 = vadd.f32 %v1042_v38, %v1024_v25  ;;  %v1026_v34 = vadd.f32 %v1025_v36, %v2692_v19  ;;  %v2122_v36 = vmov 4096.0  }
 0x1c6   :  { %v1006_v40 = vpop.f32.mrf.mxu1  ;;  %v990_v58 = vpop.f32.mrf.mxu0  ;;  %2037 = vrcp.f32 %v2122_v36 }
 0x1c7   :  { %v1128_v12 = vadd.f32 %v2742_v33, %v2740_v6  ;;  %v1141_v14 = vmul.f32 %v2742_v33, %v2742_v33  ;;  %v2752_v44 = vadd.f32 %v1006_v40, %v988_v41 }
 0x1c9   :  { %1129 = vadd.xlane.f32.xlu2 %v1128_v12  ;;  %v1148_v42 = vadd.f32 %v1141_v14, %v1140_v37  ;;  %v1142_v46 = vmul.f32 %v2752_v44, %v2752_v44 }
 0x1cb   :  { %1149 = vadd.xlane.f32.xlu1 %v1148_v42 }
 0x1cc   :  { %v1044_v2 = vpop.f32.mrf.mxu3  ;;  %v1028_v57 = vpop.f32.mrf.mxu2 }
 0x1cd   :  { %v2754_v61 = vadd.f32 %v1044_v2, %v1026_v34  ;;  %v2038_v40 = vpop.eup %2037 }
 0x1ce   :  { %v1009_v54 = vpop.f32.mrf.mxu1  ;;  %v992_v62 = vpop.f32.mrf.mxu0  ;;  %v1174_v41 = vmul.f32 4096.0, %v2038_v40  ;;  %vm1178_vm8 = vweird.f32 %v2038_v40 }
 0x1cf   :  { %v1131_v45 = vadd.f32 %v2754_v61, %v2752_v44  ;;  %v1143_v47 = vmul.f32 %v2754_v61, %v2754_v61 }
 0x1d0   :  { %v1175_v42 = vsub.f32 1.0, %v1174_v41 }
 0x1d1   :  { %1132 = vadd.xlane.f32.xlu0 %v1131_v45  ;;  %v1151_v4 = vadd.f32 %v1143_v47, %v1142_v46 }
 0x1d2   :  { %v1176_v46 = vmul.f32 %v2038_v40, %v1175_v42 }
 0x1d3   :  { %1152 = vadd.xlane.f32.xlu2 %v1151_v4 }
 0x1d4   :  { %v1047_v17 = vpop.f32.mrf.mxu3  ;;  %v1030_v3 = vpop.f32.mrf.mxu2 }
 0x1d6   :  { %v1011_v59 = vpop.f32.mrf.mxu1 }
 0x1dc   :  { %v1049_v29 = vpop.f32.mrf.mxu3 }
 0x1e5   :  { %768 = vperm.xlu0 %2021, %v2765_v31  }
 0x1eb   :  { %763 = vperm.xlu2 %2028, %v2771_v52  }
 0x208   :  { %v1080_v10 = vpop.f32.mrf.mxu3  ;;  %v1118_v51 = vpop.f32.mrf.mxu2 }
 0x212   :  { %v1061_v22 = vpop.f32.mrf.mxu1  ;;  %v1099_v39 = vpop.f32.mrf.mxu0 }
 0x213   :  { %v1062_v43 = vadd.f32 %v1061_v22, %v2673_v9  ;;  %v1100_v5 = vadd.f32 %v1099_v39, %v2673_v9 }
 0x215   :  { %v2802_v18 = vadd.f32 %v1080_v10, %v1062_v43  ;;  %v2804_v28 = vadd.f32 %v1118_v51, %v1100_v5 }
 0x217   :  { %v1453_v35 = vmul.f32 %v2802_v18, %v2802_v18  ;;  %v1454_v12 = vmul.f32 %v2804_v28, %v2804_v28 }
 0x219   :  { %v1461_v14 = vadd.f32 %v1454_v12, %v1453_v35 }
 0x23c   :  { %v1130_v53 = vpop.xlane.xlu2 %1129 }
 0x23d   :  { %v1161_v32 = vsel %vm3098_vm1, %v1130_v53, 0.0  ;;  %v1177_v53 = vadd.f32 %v2038_v40, %v1176_v46 }
 0x23e   :  { %v1150_v21 = vpop.xlane.xlu1 %1149 }
 0x23f   :  { %v1182_v0 = vsel %vm3101_vm15, %v1150_v21, 0.0  ;;  %v1063_v21 = vpop.f32.mrf.mxu1  ;;  %vm3110_vm15 = vmmov %vm3102_vm0 }
 0x240   :  { %v1064_v5 = vadd.f32 %v1063_v21, %v2692_v19  ;;  %v2865_v21 = vld [vmem:[%s3025_s2] sm:$0xff] }
 0x244   :  { %v1133_v55 = vpop.xlane.xlu0 %1132 }
 0x245   :  { %v1162_v16 = vsel %vm3099_vm4, %v1133_v55, 0.0 }
 0x246   :  { %v1153_v30 = vpop.xlane.xlu2 %1152  ;;  %v1163_v49 = vadd.f32 %v1162_v16, %v1161_v32  ;;  %v1179_v32 = vsel %vm1178_vm8, %v2038_v40, %v1177_v53  ;;  %vm3111_vm8 = vmmov %vm3102_vm0 }
 0x247   :  { %v1183_v63 = vsel %vm3100_vm2, %v1153_v30, 0.0 }
 0x248   :  { %1164 = vadd.xlane.f32.xlu1 %v1163_v49  ;;  %v1184_v1 = vadd.f32 %v1183_v63, %v1182_v0  ;;  %v1082_v0 = vpop.f32.mrf.mxu3 }
 0x24e   :  { %v2778_v23 = vpop.permute.xlu2 %763 }
 0x24f   :  { %v991_v7 = vadd.f32 %v990_v58, %v2778_v23  ;;  %v1029_v8 = vadd.f32 %v1028_v57, %v2778_v23 }
 0x250   :  { %1185 = vadd.xlane.f32.xlu1 %v1184_v1  ;;  %v1085_v22 = vpop.f32.mrf.mxu3 }
 0x251   :  { %v2782_v50 = vadd.f32 %v1009_v54, %v991_v7  ;;  %v2784_v11 = vadd.f32 %v1047_v17, %v1029_v8  ;;  %v1066_v8 = vpop.f32.mrf.mxu1 }
 0x253   :  { %v1144_v15 = vmul.f32 %v2782_v50, %v2782_v50  ;;  %v1145_v56 = vmul.f32 %v2784_v11, %v2784_v11  ;;  %v1134_v20 = vadd.f32 %v2784_v11, %v2782_v50 }
 0x255   :  { %v1154_v13 = vadd.f32 %v1145_v56, %v1144_v15 }
 0x257   :  { %v2793_v24 = vpop.permute.xlu0 %768  ;;  %1155 = vadd.xlane.f32.xlu2 %v1154_v13 }
 0x258   :  { %v993_v26 = vadd.f32 %v992_v62, %v2793_v24  ;;  %v1031_v27 = vadd.f32 %v1030_v3, %v2793_v24  ;;  %1135 = vadd.xlane.f32.xlu1 %v1134_v20  ;;  %v1101_v20 = vpop.f32.mrf.mxu0  ;;  %v1087_v51 = vpop.f32.mrf.mxu3 }
 0x259   :  { %v1068_v43 = vpop.f32.mrf.mxu1  ;;  %v1102_v10 = vadd.f32 %v1101_v20, %v2692_v19 }
 0x25a   :  { %v2798_v48 = vadd.f32 %v1011_v59, %v993_v26  ;;  %v2800_v60 = vadd.f32 %v1049_v29, %v1031_v27  ;;  %v1441_v26 = vadd.f32 %v2804_v28, %v2802_v18  ;;  %v1120_v27 = vpop.f32.mrf.mxu2 }
 0x25c   :  { %v1137_v25 = vadd.f32 %v2800_v60, %v2798_v48  ;;  %v1146_v9 = vmul.f32 %v2798_v48, %v2798_v48  ;;  %v1147_v38 = vmul.f32 %v2800_v60, %v2800_v60 }
 0x25e   :  { %1138 = vadd.xlane.f32.xlu0 %v1137_v25  ;;  %v1157_v37 = vadd.f32 %v1147_v38, %v1146_v9  ;;  %v2824_v25 = vadd.f32 %v1082_v0, %v1064_v5  ;;  %v2826_v9 = vadd.f32 %v1120_v27, %v1102_v10 }
 0x260   :  { %1158 = vadd.xlane.f32.xlu1 %v1157_v37  ;;  %v1444_v37 = vadd.f32 %v2826_v9, %v2824_v25  ;;  %v1123_v35 = vpop.f32.mrf.mxu3  ;;  %v1455_v12 = vmul.f32 %v2824_v25, %v2824_v25  ;;  %v1456_v19 = vmul.f32 %v2826_v9, %v2826_v9 }
 0x261   :  { %v1104_v38 = vpop.f32.mrf.mxu1 }
 0x262   :  { %v1105_v36 = vadd.f32 %v1104_v38, %v2778_v23  ;;  %v1464_v40 = vadd.f32 %v1456_v19, %v1455_v12 }
 0x264   :  { %v2836_v42 = vadd.f32 %v1123_v35, %v1105_v36 }
 0x266   :  { %1462 = vadd.xlane.f32.xlu0 %v1461_v14  ;;  %v1067_v14 = vadd.f32 %v1066_v8, %v2778_v23 }
 0x268   :  { %v1125_v46 = vpop.f32.mrf.mxu3 }
 0x269   :  { %v1106_v41 = vpop.f32.mrf.mxu1 }
 0x2bb   :  { %v1165_v34 = vpop.xlane.xlu1 %1164 }
 0x2bc   :  { %v1166_v2 = vrot.slane %v1165_v34, 4 }
 0x2be   :  { %v1167_v45 = vadd.f32 %v1166_v2, %v1165_v34  ;;  %v1069_v34 = vadd.f32 %v1068_v43, %v2793_v24  ;;  %v1107_v2 = vadd.f32 %v1106_v41, %v2793_v24  ;;  %v2123_v24 = vmov 2  }
 0x2bf   :  { %2029 = vset.pattern.permute.xlu1 %v2123_v24 }
 0x2c0   :  { %v1168_v47 = vrot.slane %v1167_v45, 2  ;;  %v2846_v23 = vadd.f32 %v1125_v46, %v1107_v2 }
 0x2c2   :  { %v1169_v4 = vadd.f32 %v1168_v47, %v1167_v45  ;;  %v2840_v45 = vadd.f32 %v1085_v22, %v1067_v14  ;;  %v2844_v47 = vadd.f32 %v1087_v51, %v1069_v34  ;;  %v1458_v34 = vmul.f32 %v2836_v42, %v2836_v42 }
 0x2c3   :  { %v1186_v54 = vpop.xlane.xlu1 %1185 }
 0x2c4   :  { %v1187_v58 = vrot.slane %v1186_v54, 4  ;;  %v1170_v17 = vrot.slane %v1169_v4, 1  ;;  %v1459_v53 = vmul.f32 %v2844_v47, %v2844_v47  ;;  %v1450_v36 = vadd.f32 %v2846_v23, %v2844_v47 }
 0x2c5   :  { %v1457_v41 = vmul.f32 %v2840_v45, %v2840_v45 }
 0x2c6   :  { %v1188_v55 = vadd.f32 %v1187_v58, %v1186_v54  ;;  %v1171_v57 = vadd.f32 %v1170_v17, %v1169_v4  ;;  %v1447_v4 = vadd.f32 %v2836_v42, %v2840_v45  ;;  %v1460_v54 = vmul.f32 %v2846_v23, %v2846_v23 }
 0x2c7   :  { %v1467_v2 = vadd.f32 %v1458_v34, %v1457_v41 }
 0x2c8   :  { %v1189_v16 = vrot.slane %v1188_v55, 2  ;;  %1947 = vpush %v1171_v57  ;;  %v1470_v58 = vadd.f32 %v1460_v54, %v1459_v53 }
 0x2c9   :  { %1949 = vpush %v1179_v32 }
 0x2ca   :  { %v1190_v30 = vadd.f32 %v1189_v16, %v1188_v55  ;;  %v1156_v15 = vpop.xlane.xlu2 %1155 }
 0x2cb   :  { %v1136_v49 = vpop.xlane.xlu1 %1135  ;;  %v1262_v39 = vsel %vm3105_vm7, %v1156_v15, 0.0 }
 0x2cc   :  { %v1191_v59 = vrot.slane %v1190_v30, 1  ;;  %v1241_v29 = vsel %vm3102_vm0, %v1136_v49, 0.0 }
 0x2ce   :  { %v1192_v62 = vadd.f32 %v1191_v59, %v1190_v30 }
 0x2d0   :  { %1951 = vpush %v1192_v62  ;;  %v2125_v62 = vmov 1  }
 0x2d1   :  { %v1139_v63 = vpop.xlane.xlu0 %1138  ;;  %2031 = vset.pattern.permute.xlu2 %v2125_v62  ;;  %2032 = vset.pattern.permute.xlu0 %v2125_v62 }
 0x2d2   :  { %v1242_v1 = vsel %vm3103_vm3, %v1139_v63, 0.0  ;;  %vm3112_vm3 = vmmov %vm3102_vm0 }
 0x2d3   :  { %v1243_v3 = vadd.f32 %v1242_v1, %v1241_v29  ;;  %v1159_v7 = vpop.xlane.xlu1 %1158 }
 0x2d4   :  { %v1263_v56 = vsel %vm3104_vm5, %v1159_v7, 0.0 }
 0x2d5   :  { %1244 = vadd.xlane.f32.xlu1 %v1243_v3  ;;  %v1264_v13 = vadd.f32 %v1263_v56, %v1262_v39 }
 0x2d9   :  { %v1463_v35 = vpop.xlane.xlu0 %1462 }
 0x2da   :  { %v1494_v19 = vsel %vm3108_vm13, %v1463_v35, 0.0 }
 0x2dd   :  { %1265 = vadd.xlane.f32.xlu1 %v1264_v13 }
 0x2e5   :  { %1442 = vadd.xlane.f32.xlu1 %v1441_v26 }
 0x2ed   :  { %1445 = vadd.xlane.f32.xlu1 %v1444_v37 }
 0x2f5   :  { %1465 = vadd.xlane.f32.xlu1 %v1464_v40 }
 0x2f9   :  { %s1948_s30 = spop %1947 }
 0x2fa   :  { %s2842_s4 = spop %1949 }
 0x2fb   :  { %s2851_s5 = smul.f32 %s2842_s4, %s1948_s30 }
 0x2fd   :  { %1448 = vadd.xlane.f32.xlu1 %v1447_v4  ;;  %s1203_s7 = smul.f32 %s2851_s5, %s2851_s5 }
 0x301   :  { %s1952_s6 = spop %1951 }
 0x302   :  { %s1202_s8 = smul.f32 %s1952_s6, %s2842_s4 }
 0x304   :  { %s1204_s9 = ssub.f32 %s1202_s8, %s1203_s7 }
 0x305   :  { %1471 = vadd.xlane.f32.xlu1 %v1470_v58 }
 0x306   :  { %s1205_s11 = smax.f32 %s2124_s10, %s1204_s9 }
 0x307   :  { %s1206_s12 = sadd.f32 1e-05, %s1205_s11 }
 0x309   :  { %v1207_v17 = vstv %s1206_s12 }
 0x30a   :  { %2039 = vrsqrt.f32 %v1207_v17  ;;  %vm1214_vm14 = vweird.f32 %v1207_v17 }
 0x310   :  { %v2040_v55 = vpop.eup %2039 }
 0x311   :  { %v1209_v57 = vmul.f32 %v2040_v55, %v1207_v17  ;;  %vm1215_vm9 = vweird.f32 %v2040_v55 }
 0x312   :  { %vm1216_vm11 = vmor %vm1214_vm14, %vm1215_vm9 }
 0x313   :  { %v1210_v32 = vmul.f32 %v2040_v55, %v1209_v57 }
 0x315   :  { %v1211_v16 = vmul.f32 0.5, %v1210_v32 }
 0x317   :  { %v1212_v30 = vsub.f32 1.5, %v1211_v16 }
 0x319   :  { %v1213_v49 = vmul.f32 %v2040_v55, %v1212_v30 }
 0x31b   :  { %v1217_v59 = vsel %vm1216_vm11, %v2040_v55, %v1213_v49  ;;  %v2897_v49 = vstv %s2851_s5 }
 0x31c   :  { %1953 = vpush %v1217_v59  ;;  %v1321_v59 = vsub.f32 %v2740_v6, %v2897_v49 }
 0x31e   :  { %1362 = vperm.xlu1 %2029, %v2865_v21  }
 0x326   :  { %2030 = vset.pattern.permute.xlu1 %v2125_v62 }
 0x348   :  { %v1245_v63 = vpop.xlane.xlu1 %1244 }
 0x349   :  { %v1246_v0 = vrot.slane %v1245_v63, 4 }
 0x34b   :  { %v1247_v29 = vadd.f32 %v1246_v0, %v1245_v63  ;;  %v1322_v63 = vsub.f32 %v2742_v33, %v2897_v49 }
 0x34d   :  { %v1248_v1 = vrot.slane %v1247_v29, 2  ;;  %s2871_s15 = spop %1953 }
 0x34e   :  { %v1236_v3 = vstv %s2871_s15 }
 0x34f   :  { %v1329_v7 = vmul.f32 %v2865_v21, %v1236_v3  ;;  %v1249_v8 = vadd.f32 %v1248_v1, %v1247_v29 }
 0x350   :  { %v1266_v15 = vpop.xlane.xlu1 %1265 }
 0x351   :  { %v1267_v56 = vrot.slane %v1266_v15, 4  ;;  %1335 = vperm.xlu1 %2030, %v1329_v7   ;;  %v1250_v22 = vrot.slane %v1249_v8, 1 }
 0x353   :  { %v1268_v39 = vadd.f32 %v1267_v56, %v1266_v15  ;;  %v1251_v13 = vadd.f32 %v1250_v22, %v1249_v8 }
 0x355   :  { %v1269_v20 = vrot.slane %v1268_v39, 2  ;;  %1955 = vpush %v1251_v13 }
 0x357   :  { %v1270_v43 = vadd.f32 %v1269_v20, %v1268_v39 }
 0x358   :  { %v1443_v5 = vpop.xlane.xlu1 %1442 }
 0x359   :  { %v1271_v10 = vrot.slane %v1270_v43, 1  ;;  %v1473_v51 = vsel %vm3106_vm12, %v1443_v5, 0.0 }
 0x35b   :  { %v1272_v26 = vadd.f32 %v1271_v10, %v1270_v43 }
 0x35d   :  { %1957 = vpush %v1272_v26 }
 0x360   :  { %v1446_v27 = vpop.xlane.xlu1 %1445 }
 0x361   :  { %v1474_v38 = vsel %vm3107_vm6, %v1446_v27, 0.0 }
 0x362   :  { %v1475_v37 = vadd.f32 %v1474_v38, %v1473_v51 }
 0x364   :  { %1476 = vadd.xlane.f32.xlu2 %v1475_v37 }
 0x368   :  { %v1466_v12 = vpop.xlane.xlu1 %1465 }
 0x369   :  { %v1495_v14 = vsel %vm3109_vm10, %v1466_v12, 0.0 }
 0x36a   :  { %v1496_v40 = vadd.f32 %v1495_v14, %v1494_v19 }
 0x36c   :  { %1451 = vadd.xlane.f32.xlu2 %v1450_v36  ;;  %1497 = vadd.xlane.f32.xlu0 %v1496_v40 }
 0x370   :  { %v1449_v57 = vpop.xlane.xlu1 %1448 }
 0x371   :  { %v1541_v14 = vsel %vm3110_vm15, %v1449_v57, 0.0 }
 0x374   :  { %1468 = vadd.xlane.f32.xlu0 %v1467_v2 }
 0x378   :  { %v1472_v16 = vpop.xlane.xlu1 %1471 }
 0x386   :  { %s1956_s16 = spop %1955 }
 0x387   :  { %s2888_s17 = smul.f32 %s1956_s16, %s2842_s4 }
 0x389   :  { %s1283_s18 = smul.f32 %s2888_s17, %s2888_s17 }
 0x38e   :  { %s1958_s19 = spop %1957 }
 0x38f   :  { %s1282_s20 = smul.f32 %s1958_s19, %s2842_s4 }
 0x390   :  { %v2894_v30 = vpop.permute.xlu1 %1362 }
 0x391   :  { %s1284_s21 = ssub.f32 %s1282_s20, %s1283_s18 }
 0x393   :  { %s1285_s22 = smax.f32 %s2124_s10, %s1284_s21 }
 0x394   :  { %s1286_s23 = sadd.f32 1e-05, %s1285_s22 }
 0x396   :  { %v1287_v46 = vstv %s1286_s23 }
 0x397   :  { %2041 = vrsqrt.f32 %v1287_v46  ;;  %vm1294_vm4 = vweird.f32 %v1287_v46 }
 0x39d   :  { %v2042_v4 = vpop.eup %2041 }
 0x39e   :  { %v1289_v53 = vmul.f32 %v2042_v4, %v1287_v46  ;;  %vm1295_vm1 = vweird.f32 %v2042_v4 }
 0x39f   :  { %vm1296_vm2 = vmor %vm1294_vm4, %vm1295_vm1 }
 0x3a0   :  { %v1290_v54 = vmul.f32 %v2042_v4, %v1289_v53 }
 0x3a2   :  { %v1291_v58 = vmul.f32 0.5, %v1290_v54 }
 0x3a4   :  { %v1292_v17 = vsub.f32 1.5, %v1291_v58  ;;  %v1563_v58 = vsel %vm3102_vm0, %v1472_v16, 0.0 }
 0x3a6   :  { %v1293_v55 = vmul.f32 %v2042_v4, %v1292_v17 }
 0x3a8   :  { %v1297_v32 = vsel %vm1296_vm2, %v2042_v4, %v1293_v55 }
 0x3a9   :  { %1959 = vpush %v1297_v32 }
 0x3c3   :  { %v1336_v0 = vpop.permute.xlu1 %1335 }
 0x3c4   :  { %v1353_v29 = vmul.f32 %v1336_v0, %v1321_v59  ;;  %v1354_v1 = vmul.f32 %v1336_v0, %v1322_v63  ;;  %v2112_v59 = vld [vmem:[%s3025_s2 + $0x8] sm:$0xff] }
 0x3c5   :  { %v1330_v63 = vmul.f32 %v2112_v59, %v1236_v3 }
 0x3c6   :  { %v1377_v7 = vadd.f32 %v2894_v30, %v1353_v29  ;;  %v1378_v8 = vadd.f32 %v2894_v30, %v1354_v1 }
 0x3c8   :  { %v1385_v15 = vsub.f32 0.0, %v1377_v7  ;;  %v1386_v56 = vsub.f32 0.0, %v1378_v8 }
 0x3ca   :  { %v1393_v22 = vmul.f32 1.442695, %v1385_v15  ;;  %v1395_v39 = vmul.f32 1.442695, %v1386_v56 }
 0x3cc   :  { %2043 = vpow2.f32 %v1393_v22 }
 0x3cd   :  { %2045 = vpow2.f32 %v1395_v39 }
 0x3d2   :  { %v2044_v13 = vpop.eup %2043 }
 0x3d3   :  { %v2046_v20 = vpop.eup %2045  ;;  %v1409_v43 = vadd.f32 1.0, %v2044_v13 }
 0x3d4   :  { %v1410_v6 = vadd.f32 1.0, %v2046_v20 }
 0x3d5   :  { %2047 = vrcp.f32 %v1409_v43 }
 0x3d6   :  { %2049 = vrcp.f32 %v1410_v6 }
 0x3d7   :  { %v1477_v33 = vpop.xlane.xlu2 %1476 }
 0x3d8   :  { %v1478_v5 = vrot.slane %v1477_v33, 4 }
 0x3da   :  { %v1479_v10 = vadd.f32 %v1478_v5, %v1477_v33  ;;  %s1960_s1 = spop %1959 }
 0x3db   :  { %v2048_v26 = vpop.eup %2047  ;;  %v1316_v0 = vstv %s1960_s1 }
 0x3dc   :  { %v2050_v27 = vpop.eup %2049  ;;  %v1425_v51 = vmul.f32 %v2048_v26, %v1377_v7  ;;  %v1480_v38 = vrot.slane %v1479_v10, 2  ;;  %v1331_v16 = vmul.f32 %v1316_v0, %v2771_v52  ;;  %v1332_v29 = vmul.f32 %v1316_v0, %v2765_v31 }
 0x3dd   :  { %v1426_v37 = vmul.f32 %v2050_v27, %v1378_v8 }
 0x3de   :  { %1433 = vst [vmem:[%s3027_s3] sm:$0xff] %v1425_v51  ;;  %v1481_v35 = vadd.f32 %v1480_v38, %v1479_v10 }
 0x3df   :  { %1434 = vst [vmem:[%s3027_s3 + $0x8] sm:$0xff] %v1426_v37  ;;  %v1452_v12 = vpop.xlane.xlu2 %1451  ;;  %v1498_v19 = vpop.xlane.xlu0 %1497 }
 0x3e0   :  { %v1542_v36 = vsel %vm3111_vm8, %v1452_v12, 0.0  ;;  %v1499_v40 = vrot.slane %v1498_v19, 4  ;;  %v1482_v41 = vrot.slane %v1481_v35, 1 }
 0x3e1   :  { %v1543_v34 = vadd.f32 %v1542_v36, %v1541_v14  ;;  %v2933_v36 = vstv %s2888_s17 }
 0x3e2   :  { %v1500_v2 = vadd.f32 %v1499_v40, %v1498_v19  ;;  %v1483_v46 = vadd.f32 %v1482_v41, %v1481_v35  ;;  %v1325_v40 = vsub.f32 %v2782_v50, %v2933_v36  ;;  %v1326_v41 = vsub.f32 %v2784_v11, %v2933_v36 }
 0x3e3   :  { %1544 = vadd.xlane.f32.xlu2 %v1543_v34 }
 0x3e4   :  { %v1501_v4 = vrot.slane %v1500_v2, 2  ;;  %1961 = vpush %v1483_v46 }
 0x3e6   :  { %v1502_v53 = vadd.f32 %v1501_v4, %v1500_v2 }
 0x3e7   :  { %v1469_v54 = vpop.xlane.xlu0 %1468 }
 0x3e8   :  { %v1562_v17 = vsel %vm3112_vm3, %v1469_v54, 0.0  ;;  %v1503_v55 = vrot.slane %v1502_v53, 1 }
 0x3e9   :  { %v1564_v32 = vadd.f32 %v1563_v58, %v1562_v17 }
 0x3ea   :  { %v1504_v57 = vadd.f32 %v1503_v55, %v1502_v53  ;;  %v1324_v53 = vsub.f32 %v2754_v61, %v2897_v49 }
 0x3eb   :  { %1565 = vadd.xlane.f32.xlu0 %v1564_v32 }
 0x3ec   :  { %1963 = vpush %v1504_v57 }
 0x3fb   :  { %1340 = vperm.xlu2 %2031, %v1330_v63  }
 0x3ff   :  { %1345 = vperm.xlu0 %2032, %v1331_v16  }
 0x403   :  { %1350 = vperm.xlu2 %2031, %v1332_v29  }
 0x407   :  { %2033 = vset.pattern.permute.xlu0 %v2123_v24 }
 0x408   :  { %1366 = vperm.xlu0 %2033, %v2112_v59  }
 0x410   :  { %2036 = vset.pattern.permute.xlu0 %v2125_v62 }
 0x415   :  { %s1962_s29 = spop %1961 }
 0x416   :  { %s2925_s30 = smul.f32 %s1962_s29, %s2842_s4 }
 0x418   :  { %s1515_s2 = smul.f32 %s2925_s30, %s2925_s30 }
 0x41d   :  { %s1964_s5 = spop %1963 }
 0x41e   :  { %s1514_s6 = smul.f32 %s1964_s5, %s2842_s4 }
 0x420   :  { %s1516_s7 = ssub.f32 %s1514_s6, %s1515_s2 }
 0x422   :  { %s1517_s8 = smax.f32 %s2124_s10, %s1516_s7 }
 0x423   :  { %s1518_s9 = sadd.f32 1e-05, %s1517_s8 }
 0x425   :  { %v1519_v3 = vstv %s1518_s9 }
 0x426   :  { %2051 = vrsqrt.f32 %v1519_v3  ;;  %vm1526_vm7 = vweird.f32 %v1519_v3 }
 0x42c   :  { %v2052_v1 = vpop.eup %2051 }
 0x42d   :  { %v1521_v7 = vmul.f32 %v2052_v1, %v1519_v3  ;;  %vm1527_vm5 = vweird.f32 %v2052_v1 }
 0x42e   :  { %vm1528_vm9 = vmor %vm1526_vm7, %vm1527_vm5 }
 0x42f   :  { %v1522_v8 = vmul.f32 %v2052_v1, %v1521_v7 }
 0x431   :  { %v1523_v15 = vmul.f32 0.5, %v1522_v8 }
 0x433   :  { %v1524_v56 = vsub.f32 1.5, %v1523_v15 }
 0x435   :  { %v1525_v62 = vmul.f32 %v2052_v1, %v1524_v56 }
 0x437   :  { %v1529_v22 = vsel %vm1528_vm9, %v2052_v1, %v1525_v62 }
 0x438   :  { %1965 = vpush %v1529_v22 }
 0x456   :  { %v1545_v39 = vpop.xlane.xlu2 %1544 }
 0x457   :  { %v1546_v13 = vrot.slane %v1545_v39, 4 }
 0x459   :  { %v1547_v20 = vadd.f32 %v1546_v13, %v1545_v39 }
 0x45b   :  { %v1548_v43 = vrot.slane %v1547_v20, 2 }
 0x45d   :  { %v1549_v6 = vadd.f32 %v1548_v43, %v1547_v20  ;;  %v1531_v20 = vstv %s2925_s30 }
 0x45e   :  { %v1566_v33 = vpop.xlane.xlu0 %1565  ;;  %v1341_v4 = vpop.permute.xlu2 %1340  ;;  %v1611_v43 = vsub.f32 %v2824_v25, %v1531_v20  ;;  %v1609_v25 = vsub.f32 %v2802_v18, %v1531_v20 }
 0x45f   :  { %v1567_v5 = vrot.slane %v1566_v33, 4  ;;  %v1550_v10 = vrot.slane %v1549_v6, 1  ;;  %v1356_v58 = vmul.f32 %v1341_v4, %v1324_v53 }
 0x461   :  { %v1568_v26 = vadd.f32 %v1567_v5, %v1566_v33  ;;  %v1551_v27 = vadd.f32 %v1550_v10, %v1549_v6  ;;  %v1612_v6 = vsub.f32 %v2826_v9, %v1531_v20  ;;  %v1610_v9 = vsub.f32 %v2804_v28, %v1531_v20 }
 0x463   :  { %v1569_v51 = vrot.slane %v1568_v26, 2  ;;  %1967 = vpush %v1551_v27 }
 0x465   :  { %v1570_v38 = vadd.f32 %v1569_v51, %v1568_v26 }
 0x466   :  { %v2960_v13 = vpop.permute.xlu2 %1350 }
 0x467   :  { %v1571_v37 = vrot.slane %v1570_v38, 1 }
 0x469   :  { %s1966_s11 = spop %1965  ;;  %v1572_v35 = vadd.f32 %v1571_v37, %v1570_v38 }
 0x46a   :  { %v1536_v12 = vstv %s1966_s11 }
 0x46b   :  { %v1617_v19 = vmul.f32 %v2865_v21, %v1536_v12  ;;  %v1618_v14 = vmul.f32 %v2112_v59, %v1536_v12  ;;  %1969 = vpush %v1572_v35  ;;  %v1323_v21 = vsub.f32 %v2752_v44, %v2897_v49 }
 0x46d   :  { %1628 = vperm.xlu2 %2031, %v1618_v14   ;;  %1623 = vperm.xlu1 %2030, %v1617_v19   ;;  %v1355_v54 = vmul.f32 %v1341_v4, %v1323_v21 }
 0x471   :  { %v1346_v34 = vpop.permute.xlu0 %1345 }
 0x472   :  { %v2939_v2 = vmul.f32 %v1346_v34, %v1325_v40  ;;  %v2941_v46 = vmul.f32 %v1346_v34, %v1326_v41 }
 0x47a   :  { %v1367_v17 = vpop.permute.xlu0 %1366 }
 0x47b   :  { %v1379_v55 = vadd.f32 %v1367_v17, %v1355_v54  ;;  %v1380_v50 = vadd.f32 %v1367_v17, %v1356_v58 }
 0x47d   :  { %v1387_v32 = vsub.f32 0.0, %v1379_v55  ;;  %v1388_v57 = vsub.f32 0.0, %v1380_v50 }
 0x47f   :  { %v1397_v11 = vmul.f32 1.442695, %v1387_v32  ;;  %v1399_v59 = vmul.f32 1.442695, %v1388_v57 }
 0x481   :  { %2053 = vpow2.f32 %v1397_v11 }
 0x482   :  { %2055 = vpow2.f32 %v1399_v59 }
 0x487   :  { %v2054_v63 = vpop.eup %2053 }
 0x488   :  { %v2056_v0 = vpop.eup %2055  ;;  %v1411_v16 = vadd.f32 1.0, %v2054_v63 }
 0x489   :  { %v1412_v44 = vadd.f32 1.0, %v2056_v0 }
 0x48a   :  { %2057 = vrcp.f32 %v1411_v16 }
 0x48b   :  { %2059 = vrcp.f32 %v1412_v44 }
 0x490   :  { %v2058_v61 = vpop.eup %2057 }
 0x491   :  { %v2060_v49 = vpop.eup %2059  ;;  %v1427_v29 = vmul.f32 %v2058_v61, %v1379_v55 }
 0x492   :  { %v1428_v3 = vmul.f32 %v2060_v49, %v1380_v50 }
 0x493   :  { %1435 = vst [vmem:[%s3027_s3 + $0x10] sm:$0xff] %v1427_v29 }
 0x494   :  { %1436 = vst [vmem:[%s3027_s3 + $0x18] sm:$0xff] %v1428_v3  ;;  %s1968_s16 = spop %1967 }
 0x495   :  { %s2954_s17 = smul.f32 %s1968_s16, %s2842_s4 }
 0x497   :  { %s1583_s18 = smul.f32 %s2954_s17, %s2954_s17 }
 0x49c   :  { %s1970_s19 = spop %1969 }
 0x49d   :  { %s1582_s20 = smul.f32 %s1970_s19, %s2842_s4 }
 0x49f   :  { %s1584_s21 = ssub.f32 %s1582_s20, %s1583_s18 }
 0x4a1   :  { %s1585_s22 = smax.f32 %s2124_s10, %s1584_s21 }
 0x4a2   :  { %s1586_s23 = sadd.f32 1e-05, %s1585_s22 }
 0x4a4   :  { %v1587_v1 = vstv %s1586_s23 }
 0x4a5   :  { %2061 = vrsqrt.f32 %v1587_v1  ;;  %vm1594_vm11 = vweird.f32 %v1587_v1 }
 0x4ab   :  { %v2062_v7 = vpop.eup %2061 }
 0x4ac   :  { %v1589_v8 = vmul.f32 %v2062_v7, %v1587_v1  ;;  %vm1595_vm14 = vweird.f32 %v2062_v7 }
 0x4ad   :  { %vm1596_vm12 = vmor %vm1594_vm11, %vm1595_vm14 }
 0x4ae   :  { %v1590_v15 = vmul.f32 %v2062_v7, %v1589_v8 }
 0x4b0   :  { %v1591_v56 = vmul.f32 0.5, %v1590_v15 }
 0x4b2   :  { %v1592_v62 = vsub.f32 1.5, %v1591_v56  ;;  %v1599_v56 = vstv %s2954_s17 }
 0x4b3   :  { %v1613_v20 = vsub.f32 %v2840_v45, %v1599_v56  ;;  %v1615_v45 = vsub.f32 %v2844_v47, %v1599_v56 }
 0x4b4   :  { %v1593_v22 = vmul.f32 %v2062_v7, %v1592_v62 }
 0x4b6   :  { %v1597_v39 = vsel %vm1596_vm12, %v2062_v7, %v1593_v22 }
 0x4b7   :  { %1971 = vpush %v1597_v39 }
 0x4c7   :  { %v1629_v33 = vpop.permute.xlu2 %1628 }
 0x4c8   :  { %v1643_v5 = vmul.f32 %v1629_v33, %v1611_v43  ;;  %v1644_v10 = vmul.f32 %v1629_v33, %v1612_v6  ;;  %v1614_v43 = vsub.f32 %v2836_v42, %v1599_v56  ;;  %v1616_v42 = vsub.f32 %v2846_v23, %v1599_v56 }
 0x4ca   :  { %v1651_v26 = vadd.f32 %v1643_v5, %v1367_v17  ;;  %v1652_v27 = vadd.f32 %v1644_v10, %v1367_v17 }
 0x4cc   :  { %v1659_v51 = vsub.f32 0.0, %v1651_v26  ;;  %v1660_v38 = vsub.f32 0.0, %v1652_v27 }
 0x4ce   :  { %v1669_v37 = vmul.f32 1.442695, %v1659_v51  ;;  %v1671_v35 = vmul.f32 1.442695, %v1660_v38  ;;  %v1327_v51 = vsub.f32 %v2798_v48, %v2933_v36  ;;  %v1328_v38 = vsub.f32 %v2800_v60, %v2933_v36 }
 0x4d0   :  { %2063 = vpow2.f32 %v1669_v37 }
 0x4d1   :  { %2065 = vpow2.f32 %v1671_v35 }
 0x4d6   :  { %v2064_v12 = vpop.eup %2063 }
 0x4d7   :  { %v2066_v19 = vpop.eup %2065  ;;  %v1683_v14 = vadd.f32 1.0, %v2064_v12 }
 0x4d8   :  { %v1684_v40 = vadd.f32 1.0, %v2066_v19 }
 0x4d9   :  { %2067 = vrcp.f32 %v1683_v14  ;;  %v1359_v14 = vmul.f32 %v2960_v13, %v1327_v51 }
 0x4da   :  { %2069 = vrcp.f32 %v1684_v40  ;;  %v1360_v40 = vmul.f32 %v2960_v13, %v1328_v38 }
 0x4df   :  { %v2068_v41 = vpop.eup %2067  ;;  %v1624_v34 = vpop.permute.xlu1 %1623 }
 0x4e0   :  { %v2070_v4 = vpop.eup %2069  ;;  %v1699_v21 = vmul.f32 %v2068_v41, %v1651_v26  ;;  %v1641_v53 = vmul.f32 %v1624_v34, %v1609_v25  ;;  %v1642_v54 = vmul.f32 %v1624_v34, %v1610_v9 }
 0x4e1   :  { %v1700_v58 = vmul.f32 %v2070_v4, %v1652_v27 }
 0x4e2   :  { %1892 = vst [vmem:[%s3027_s3 + $0x50] sm:$0xff] %v1699_v21  ;;  %v1649_v17 = vadd.f32 %v1641_v53, %v2894_v30  ;;  %v1650_v55 = vadd.f32 %v1642_v54, %v2894_v30 }
 0x4e3   :  { %1893 = vst [vmem:[%s3027_s3 + $0x58] sm:$0xff] %v1700_v58 }
 0x4e4   :  { %v1657_v18 = vsub.f32 0.0, %v1649_v17  ;;  %v1658_v28 = vsub.f32 0.0, %v1650_v55 }
 0x4e6   :  { %v1665_v50 = vmul.f32 1.442695, %v1657_v18  ;;  %v1667_v32 = vmul.f32 1.442695, %v1658_v28 }
 0x4e8   :  { %2071 = vpow2.f32 %v1665_v50  ;;  %s1972_s26 = spop %1971 }
 0x4e9   :  { %2073 = vpow2.f32 %v1667_v32  ;;  %v1604_v57 = vstv %s1972_s26 }
 0x4ea   :  { %v1619_v11 = vmul.f32 %v1604_v57, %v2771_v52  ;;  %v1620_v59 = vmul.f32 %v1604_v57, %v2765_v31 }
 0x4ec   :  { %1638 = vperm.xlu2 %2031, %v1620_v59   ;;  %1633 = vperm.xlu1 %2030, %v1619_v11  }
 0x4ee   :  { %v2072_v63 = vpop.eup %2071 }
 0x4ef   :  { %v2074_v30 = vpop.eup %2073  ;;  %v1681_v0 = vadd.f32 1.0, %v2072_v63 }
 0x4f0   :  { %v1682_v16 = vadd.f32 1.0, %v2074_v30 }
 0x4f1   :  { %2075 = vrcp.f32 %v1681_v0 }
 0x4f2   :  { %2077 = vrcp.f32 %v1682_v16 }
 0x4f4   :  { %2034 = vset.pattern.permute.xlu2 %v2123_v24  ;;  %2035 = vset.pattern.permute.xlu1 %v2123_v24 }
 0x4f5   :  { %1370 = vperm.xlu2 %2034, %v2771_v52   ;;  %1374 = vperm.xlu1 %2035, %v2765_v31  }
 0x4f7   :  { %v2076_v44 = vpop.eup %2075 }
 0x4f8   :  { %v2078_v61 = vpop.eup %2077  ;;  %v1697_v49 = vmul.f32 %v2076_v44, %v1649_v17 }
 0x4f9   :  { %v1698_v29 = vmul.f32 %v2078_v61, %v1650_v55 }
 0x4fa   :  { %1890 = vst [vmem:[%s3027_s3 + $0x40] sm:$0xff] %v1697_v49 }
 0x4fb   :  { %1891 = vst [vmem:[%s3027_s3 + $0x48] sm:$0xff] %v1698_v29 }
 0x546   :  { %v1639_v3 = vpop.permute.xlu2 %1638 }
 0x547   :  { %v1647_v25 = vmul.f32 %v1639_v3, %v1615_v45  ;;  %v1648_v41 = vmul.f32 %v1639_v3, %v1616_v42 }
 0x54f   :  { %v1371_v1 = vpop.permute.xlu2 %1370 }
 0x550   :  { %v1381_v24 = vadd.f32 %v1371_v1, %v2939_v2  ;;  %v1382_v52 = vadd.f32 %v1371_v1, %v2941_v46 }
 0x552   :  { %v1389_v31 = vsub.f32 0.0, %v1381_v24  ;;  %v1390_v7 = vsub.f32 0.0, %v1382_v52 }
 0x554   :  { %v1401_v8 = vmul.f32 1.442695, %v1389_v31  ;;  %v1403_v15 = vmul.f32 1.442695, %v1390_v7 }
 0x556   :  { %2079 = vpow2.f32 %v1401_v8 }
 0x557   :  { %2081 = vpow2.f32 %v1403_v15 }
 0x55c   :  { %v2080_v62 = vpop.eup %2079 }
 0x55d   :  { %v2082_v22 = vpop.eup %2081  ;;  %v1413_v39 = vadd.f32 1.0, %v2080_v62 }
 0x55e   :  { %v1414_v6 = vadd.f32 1.0, %v2082_v22  ;;  %v1634_v33 = vpop.permute.xlu1 %1633 }
 0x55f   :  { %2083 = vrcp.f32 %v1413_v39  ;;  %v1645_v2 = vmul.f32 %v1634_v33, %v1613_v20  ;;  %v1646_v5 = vmul.f32 %v1634_v33, %v1614_v43 }
 0x560   :  { %2085 = vrcp.f32 %v1414_v6 }
 0x561   :  { %v1653_v46 = vadd.f32 %v1645_v2, %v1371_v1  ;;  %v1654_v10 = vadd.f32 %v1646_v5, %v1371_v1 }
 0x563   :  { %v1661_v26 = vsub.f32 0.0, %v1653_v46  ;;  %v1662_v27 = vsub.f32 0.0, %v1654_v10 }
 0x565   :  { %v2084_v37 = vpop.eup %2083  ;;  %v1673_v35 = vmul.f32 1.442695, %v1661_v26  ;;  %v1675_v12 = vmul.f32 1.442695, %v1662_v27 }
 0x566   :  { %v2086_v19 = vpop.eup %2085  ;;  %v1429_v9 = vmul.f32 %v2084_v37, %v1381_v24 }
 0x567   :  { %v1430_v34 = vmul.f32 %v2086_v19, %v1382_v52  ;;  %2087 = vpow2.f32 %v1673_v35  ;;  %v1375_v48 = vpop.permute.xlu1 %1374 }
 0x568   :  { %1437 = vst [vmem:[%s3027_s3 + $0x20] sm:$0xff] %v1429_v9  ;;  %2089 = vpow2.f32 %v1675_v12  ;;  %v1383_v60 = vadd.f32 %v1375_v48, %v1359_v14  ;;  %v1384_v47 = vadd.f32 %v1375_v48, %v1360_v40  ;;  %v1655_v23 = vadd.f32 %v1647_v25, %v1375_v48 }
 0x569   :  { %1438 = vst [vmem:[%s3027_s3 + $0x28] sm:$0xff] %v1430_v34  ;;  %v1656_v36 = vadd.f32 %v1648_v41, %v1375_v48 }
 0x56a   :  { %v1391_v13 = vsub.f32 0.0, %v1383_v60  ;;  %v1392_v4 = vsub.f32 0.0, %v1384_v47  ;;  %v1663_v21 = vsub.f32 0.0, %v1655_v23 }
 0x56b   :  { %v1664_v53 = vsub.f32 0.0, %v1656_v36 }
 0x56c   :  { %v1405_v54 = vmul.f32 1.442695, %v1391_v13  ;;  %v1407_v58 = vmul.f32 1.442695, %v1392_v4  ;;  %v1677_v28 = vmul.f32 1.442695, %v1663_v21 }
 0x56d   :  { %v2088_v17 = vpop.eup %2087  ;;  %v1679_v32 = vmul.f32 1.442695, %v1664_v53 }
 0x56e   :  { %v2090_v55 = vpop.eup %2089  ;;  %v1685_v18 = vadd.f32 1.0, %v2088_v17  ;;  %2091 = vpow2.f32 %v1405_v54 }
 0x56f   :  { %v1686_v50 = vadd.f32 1.0, %v2090_v55  ;;  %2093 = vpow2.f32 %v1407_v58 }
 0x570   :  { %2095 = vrcp.f32 %v1685_v18 }
 0x571   :  { %2097 = vrcp.f32 %v1686_v50 }
 0x572   :  { %2099 = vpow2.f32 %v1677_v28 }
 0x573   :  { %2101 = vpow2.f32 %v1679_v32 }
 0x574   :  { %v2092_v57 = vpop.eup %2091 }
 0x575   :  { %v2094_v11 = vpop.eup %2093  ;;  %v1415_v59 = vadd.f32 1.0, %v2092_v57 }
 0x576   :  { %v2096_v63 = vpop.eup %2095  ;;  %v1416_v30 = vadd.f32 1.0, %v2094_v11 }
 0x577   :  { %v2098_v0 = vpop.eup %2097  ;;  %v1701_v16 = vmul.f32 %v2096_v63, %v1653_v46  ;;  %2103 = vrcp.f32 %v1415_v59 }
 0x578   :  { %v2100_v44 = vpop.eup %2099  ;;  %v1702_v61 = vmul.f32 %v2098_v0, %v1654_v10  ;;  %2105 = vrcp.f32 %v1416_v30 }
 0x579   :  { %v2102_v49 = vpop.eup %2101  ;;  %1894 = vst [vmem:[%s3027_s3 + $0x60] sm:$0xff] %v1701_v16  ;;  %v1687_v29 = vadd.f32 1.0, %v2100_v44 }
 0x57a   :  { %1895 = vst [vmem:[%s3027_s3 + $0x68] sm:$0xff] %v1702_v61  ;;  %v1688_v3 = vadd.f32 1.0, %v2102_v49 }
 0x57b   :  { %2107 = vrcp.f32 %v1687_v29 }
 0x57c   :  { %2109 = vrcp.f32 %v1688_v3 }
 0x57d   :  { %v2104_v1 = vpop.eup %2103 }
 0x57e   :  { %v2106_v24 = vpop.eup %2105  ;;  %v1431_v52 = vmul.f32 %v2104_v1, %v1383_v60 }
 0x57f   :  { %v1432_v31 = vmul.f32 %v2106_v24, %v1384_v47 }
 0x580   :  { %1439 = vst [vmem:[%s3027_s3 + $0x30] sm:$0xff] %v1431_v52 }
 0x581   :  { %v2108_v7 = vpop.eup %2107  ;;  %1440 = vst [vmem:[%s3027_s3 + $0x38] sm:$0xff] %v1432_v31 }
 0x582   :  { %v2110_v8 = vpop.eup %2109  ;;  %v1703_v15 = vmul.f32 %v2108_v7, %v1655_v23 }
 0x583   :  { %v1704_v56 = vmul.f32 %v2110_v8, %v1656_v36 }
 0x584   :  { %1896 = vst [vmem:[%s3027_s3 + $0x70] sm:$0xff] %v1703_v15 }
 0x585   :  { %1897 = vst [vmem:[%s3027_s3 + $0x78] sm:$0xff] %v1704_v56 }

</bundles_post_ra>
